<compile_context>
chip_gen: v5e
topology: v5e:2x2
jax: 0.10.0
libtpu: 0.0.40
codegen_flags: <defaults>
</compile_context>

<pallas_src>
import functools

import jax
import jax.numpy as jnp
from jax.experimental import pallas as pl
from jax.experimental.pallas import tpu as pltpu


def _pick_row_tile(Ho, Wo, max_rows=128):
    """Largest divisor TH of Ho such that the (TH*Wo, Cpad) tile has 8-aligned
    rows and at most max_rows rows; prefers >=2 tiles so the grid pipelines."""
    divs = [d for d in range(1, Ho + 1) if Ho % d == 0]
    legal = [d for d in divs if (d * Wo) % 8 == 0 or d == Ho]
    fitting = [d for d in legal if d * Wo <= max_rows and d != Ho]
    if fitting:
        return max(fitting)
    small = [d for d in legal if d * Wo <= max_rows]
    if small:
        return max(small)
    return min(legal)


def _vmem_limit(block_bytes):
    # Pipeline double-buffers each tile; leave generous headroom, stay under
    # v7x's 64 MiB physical VMEM.
    need = 2 * block_bytes
    return int(min(max(4 * need, 16 << 20), 48 << 20))


def _conv_stats_kernel(x_ref, w_ref, conv_ref, stats_ref, *,
                       stride, KH, KW, TH, Wo, Cin, K2, K2pad):
    # x_ref:     (1, Hp, Wp, Cin)  bf16 padded image of sample n (resident over h-tiles)
    # w_ref:     (K2pad, Cpad)     bf16 im2col weights, (kh, kw, cin)-major rows
    # conv_ref:  (1, TH*Wo, Cpad)  f32 conv output tile (lane-dense)
    # stats_ref: (1, 1, 2, Cpad)   f32 per-tile (sum, sum_of_squares) partials
    h = pl.program_id(1)
    row0 = h * (TH * stride)  # first padded-input row needed by this output-row tile

    # Build the (TH*Wo, KH*KW*Cin) im2col patch in-kernel from shifted slices.
    pieces = []
    for kh in range(KH):
        for kw in range(KW):
            if stride == 1:
                sl = x_ref[0, pl.ds(row0 + kh, TH), pl.ds(kw, Wo), :]
            else:
                # stride folded into the load path (no post-load gather)
                sl = x_ref[0, pl.ds(row0 + kh, TH, stride=stride),
                           pl.ds(kw, Wo, stride=stride), :]
            pieces.append(sl.reshape(TH * Wo, Cin))
    if K2pad > K2:  # pad contraction dim (matches the zero rows added to w)
        pieces.append(jnp.zeros((TH * Wo, K2pad - K2), x_ref.dtype))
    patch = jnp.concatenate(pieces, axis=1)                         # (TH*Wo, K2pad) bf16

    # Single fused MXU matmul per tile, f32 accumulation.
    acc = jnp.dot(patch, w_ref[...], preferred_element_type=jnp.float32)
    conv_ref[0] = acc

    # Per-tile BatchNorm partial sums (reduced across tiles in the wrapper).
    s = jnp.sum(acc, axis=0, keepdims=True)                         # (1, Cpad)
    s2 = jnp.sum(acc * acc, axis=0, keepdims=True)                  # (1, Cpad)
    stats_ref[0, 0] = jnp.concatenate([s, s2], axis=0)              # (2, Cpad)


def _bn_silu_kernel(conv_ref, scale_ref, bias_ref, o_ref):
    # conv_ref/o_ref: (1, TH*Wo, Cpad) f32; scale/bias: (1, Cpad) f32
    y = conv_ref[0] * scale_ref[...] + bias_ref[...]
    o_ref[0] = y * jax.nn.sigmoid(y)


def cnn_block_forward(x_nchw, w_torch, gamma, beta, *, stride=1, padding=1,
                      groups=1, eps=1e-5):
    """x_nchw: (N, Cin, H, W); w_torch: (Cout, Cin, KH, KW) — PyTorch layouts."""
    if groups != 1:
        # TODO(synk): grouped convolution (groups > 1) not implemented in the kernel.
        raise NotImplementedError("groups > 1 not supported")

    N, Cin, H, W = x_nchw.shape
    Cout, _, KH, KW = w_torch.shape
    Ho = (H + 2 * padding - KH) // stride + 1
    Wo = (W + 2 * padding - KW) // stride + 1
    Hp, Wp = H + 2 * padding, W + 2 * padding

    Cpad = max(128, ((Cout + 127) // 128) * 128)   # lane-dense channel axis
    K2 = KH * KW * Cin
    K2pad = ((K2 + 7) // 8) * 8                    # sublane-aligned contraction
    TH = _pick_row_tile(Ho, Wo)
    n_ht = Ho // TH
    rows = TH * Wo

    # --- wrapper glue (one fused XLA relayout): NCHW -> NHWC, pad, cast bf16 ---
    x_nhwc = jnp.transpose(x_nchw, (0, 2, 3, 1))
    x_pad = jnp.pad(x_nhwc, ((0, 0), (padding, padding), (padding, padding), (0, 0)))
    x_pad = x_pad.astype(jnp.bfloat16)

    # (Cout, Cin, KH, KW) -> (KH, KW, Cin, Cout) -> (K2, Cout) -> zero-pad, bf16
    w_im2col = jnp.transpose(w_torch, (2, 3, 1, 0)).reshape(K2, Cout)
    w_p = jnp.pad(w_im2col, ((0, K2pad - K2), (0, Cpad - Cout))).astype(jnp.bfloat16)

    gamma_p = jnp.pad(gamma.astype(jnp.float32), (0, Cpad - Cout))
    beta_p = jnp.pad(beta.astype(jnp.float32), (0, Cpad - Cout))

    # ---------------- pass 1: conv + per-tile BN partial sums ----------------
    pass1_kernel = functools.partial(
        _conv_stats_kernel, stride=stride, KH=KH, KW=KW, TH=TH, Wo=Wo,
        Cin=Cin, K2=K2, K2pad=K2pad)

    block_bytes1 = (Hp * Wp * Cin * 2 + K2pad * Cpad * 2
                    + rows * Cpad * 4 + 2 * Cpad * 4)
    conv_out, stats = pl.pallas_call(
        pass1_kernel,
        out_shape=[
            jax.ShapeDtypeStruct((N, Ho * Wo, Cpad), jnp.float32),
            jax.ShapeDtypeStruct((N, n_ht, 2, Cpad), jnp.float32),
        ],
        grid=(N, n_ht),
        in_specs=[
            pl.BlockSpec((1, Hp, Wp, Cin), lambda n, h: (n, 0, 0, 0)),
            pl.BlockSpec((K2pad, Cpad), lambda n, h: (0, 0)),
        ],
        out_specs=[
            pl.BlockSpec((1, rows, Cpad), lambda n, h: (n, h, 0)),
            pl.BlockSpec((1, 1, 2, Cpad), lambda n, h: (n, h, 0, 0)),
        ],
        compiler_params=pltpu.CompilerParams(
            dimension_semantics=("parallel", "parallel"),
            vmem_limit_bytes=_vmem_limit(block_bytes1)),
    )(x_pad, w_p)

    # ------------- BN statistics: tiny cross-tile reduction in XLA -------------
    count = N * Ho * Wo
    tot = jnp.sum(stats, axis=(0, 1))                        # (2, Cpad)
    mean = tot[0] / count
    var = jnp.maximum(tot[1] / count - mean * mean, 0.0)     # biased variance
    inv = jax.lax.rsqrt(var + eps)
    scale = (gamma_p * inv).reshape(1, Cpad)
    bias = (beta_p - mean * gamma_p * inv).reshape(1, Cpad)

    # ---------------- pass 2: normalize + affine + SiLU ----------------
    block_bytes2 = 2 * rows * Cpad * 4 + 2 * Cpad * 4
    y = pl.pallas_call(
        _bn_silu_kernel,
        out_shape=jax.ShapeDtypeStruct((N, Ho * Wo, Cpad), jnp.float32),
        grid=(N, n_ht),
        in_specs=[
            pl.BlockSpec((1, rows, Cpad), lambda n, h: (n, h, 0)),
            pl.BlockSpec((1, Cpad), lambda n, h: (0, 0)),
            pl.BlockSpec((1, Cpad), lambda n, h: (0, 0)),
        ],
        out_specs=pl.BlockSpec((1, rows, Cpad), lambda n, h: (n, h, 0)),
        compiler_params=pltpu.CompilerParams(
            dimension_semantics=("parallel", "parallel"),
            vmem_limit_bytes=_vmem_limit(block_bytes2)),
    )(conv_out, scale, bias)

    # strip channel padding, back to NCHW
    y = y[:, :, :Cout].reshape(N, Ho, Wo, Cout)
    return jnp.transpose(y, (0, 3, 1, 2)).astype(x_nchw.dtype)


def _reference(x_nchw, w_torch, gamma, beta, *, stride, padding, eps=1e-5):
    conv = jax.lax.conv_general_dilated(
        x_nchw.astype(jnp.float32), w_torch.astype(jnp.float32),
        window_strides=(stride, stride),
        padding=((padding, padding), (padding, padding)),
        dimension_numbers=("NCHW", "OIHW", "NCHW"))
    mean = jnp.mean(conv, axis=(0, 2, 3), keepdims=True)
    var = jnp.mean((conv - mean) ** 2, axis=(0, 2, 3), keepdims=True)
    y = (conv - mean) * jax.lax.rsqrt(var + eps)
    y = y * gamma.reshape(1, -1, 1, 1) + beta.reshape(1, -1, 1, 1)
    return y * jax.nn.sigmoid(y)


if __name__ == "__main__":
    # CNNBlock(in_channels=4, out_channels=8, kernel_size=3, stride=1, padding=1)
    N, Cin, H, W = 2, 4, 16, 16
    Cout, K, stride, padding = 8, 3, 1, 1

    key = jax.random.PRNGKey(0)
    kx, kw = jax.random.split(key)
    x = jax.random.normal(kx, (N, Cin, H, W), dtype=jnp.float32)
    # Deterministic conv weight (bias=False); BN affine defaults: gamma=1, beta=0.
    w = jax.random.normal(kw, (Cout, Cin, K, K), dtype=jnp.float32) * 0.1
    gamma = jnp.ones((Cout,), jnp.float32)
    beta = jnp.zeros((Cout,), jnp.float32)

    out = cnn_block_forward(x, w, gamma, beta, stride=stride, padding=padding)
    out = jax.block_until_ready(out)

    # Reference computed on the same bf16-rounded operands the kernel consumes
    # (accumulation / BN / SiLU remain f32 in both).
    xq = x.astype(jnp.bfloat16).astype(jnp.float32)
    wq = w.astype(jnp.bfloat16).astype(jnp.float32)
    ref = _reference(xq, wq, gamma, beta, stride=stride, padding=padding)

    assert out.shape == (N, Cout, H, W)
    assert jnp.allclose(out, ref, atol=1e-3, rtol=1e-3), "mismatch vs reference"

    print("KERNEL_OK")
</pallas_src>

<mosaic_0001>
module attributes {stable_mosaic.version = 11 : i64} {
  func.func @_conv_stats_kernel(%arg0: i32, %arg1: i32, %arg2: memref<1x18x18x4xbf16, #tpu.memory_space<vmem>>, %arg3: memref<40x128xbf16, #tpu.memory_space<vmem>>, %arg4: memref<1x128x128xf32, #tpu.memory_space<vmem>>, %arg5: memref<1x1x2x128xf32, #tpu.memory_space<vmem>>) attributes {dimension_semantics = [#tpu.dimension_semantics<parallel>, #tpu.dimension_semantics<parallel>], iteration_bounds = array<i64: 2, 2>, scalar_prefetch = 0 : i64, scratch_operands = 0 : i64, tpu.core_type = #tpu.core_type<tc>, window_params = [{transform_indices = @transform_0, window_bounds = array<i64: 1, 18, 18, 4>}, {pipeline_mode = #tpu.pipeline_mode<synchronous>, transform_indices = @transform_1, window_bounds = array<i64: 40, 128>}, {transform_indices = @transform_2, window_bounds = array<i64: 1, 128, 128>}, {transform_indices = @transform_3, window_bounds = array<i64: 1, 1, 2, 128>}]} {
    %c8_i32 = arith.constant 8 : i32
    %0 = arith.muli %arg1, %c8_i32 : i32
    %c0_i32 = arith.constant 0 : i32
    %1 = arith.addi %0, %c0_i32 : i32
    %c0 = arith.constant 0 : index
    %2 = arith.index_cast %1 : i32 to index
    %c0_0 = arith.constant 0 : index
    %c0_1 = arith.constant 0 : index
    %3 = vector.load %arg2[%c0, %2, %c0_0, %c0_1] : memref<1x18x18x4xbf16, #tpu.memory_space<vmem>>, vector<1x8x16x4xbf16>
    %4 = vector.shape_cast %3 : vector<1x8x16x4xbf16> to vector<8x16x4xbf16>
    %5 = vector.shape_cast %4 : vector<8x16x4xbf16> to vector<128x4xbf16>
    %c0_i32_2 = arith.constant 0 : i32
    %6 = arith.addi %0, %c0_i32_2 : i32
    %c0_3 = arith.constant 0 : index
    %7 = arith.index_cast %6 : i32 to index
    %c1 = arith.constant 1 : index
    %c0_4 = arith.constant 0 : index
    %8 = vector.load %arg2[%c0_3, %7, %c1, %c0_4] : memref<1x18x18x4xbf16, #tpu.memory_space<vmem>>, vector<1x8x16x4xbf16>
    %9 = vector.shape_cast %8 : vector<1x8x16x4xbf16> to vector<8x16x4xbf16>
    %10 = vector.shape_cast %9 : vector<8x16x4xbf16> to vector<128x4xbf16>
    %c0_i32_5 = arith.constant 0 : i32
    %11 = arith.addi %0, %c0_i32_5 : i32
    %c0_6 = arith.constant 0 : index
    %12 = arith.index_cast %11 : i32 to index
    %c2 = arith.constant 2 : index
    %c0_7 = arith.constant 0 : index
    %13 = vector.load %arg2[%c0_6, %12, %c2, %c0_7] : memref<1x18x18x4xbf16, #tpu.memory_space<vmem>>, vector<1x8x16x4xbf16>
    %14 = vector.shape_cast %13 : vector<1x8x16x4xbf16> to vector<8x16x4xbf16>
    %15 = vector.shape_cast %14 : vector<8x16x4xbf16> to vector<128x4xbf16>
    %c1_i32 = arith.constant 1 : i32
    %16 = arith.addi %0, %c1_i32 : i32
    %c0_8 = arith.constant 0 : index
    %17 = arith.index_cast %16 : i32 to index
    %c0_9 = arith.constant 0 : index
    %c0_10 = arith.constant 0 : index
    %18 = vector.load %arg2[%c0_8, %17, %c0_9, %c0_10] : memref<1x18x18x4xbf16, #tpu.memory_space<vmem>>, vector<1x8x16x4xbf16>
    %19 = vector.shape_cast %18 : vector<1x8x16x4xbf16> to vector<8x16x4xbf16>
    %20 = vector.shape_cast %19 : vector<8x16x4xbf16> to vector<128x4xbf16>
    %c1_i32_11 = arith.constant 1 : i32
    %21 = arith.addi %0, %c1_i32_11 : i32
    %c0_12 = arith.constant 0 : index
    %22 = arith.index_cast %21 : i32 to index
    %c1_13 = arith.constant 1 : index
    %c0_14 = arith.constant 0 : index
    %23 = vector.load %arg2[%c0_12, %22, %c1_13, %c0_14] : memref<1x18x18x4xbf16, #tpu.memory_space<vmem>>, vector<1x8x16x4xbf16>
    %24 = vector.shape_cast %23 : vector<1x8x16x4xbf16> to vector<8x16x4xbf16>
    %25 = vector.shape_cast %24 : vector<8x16x4xbf16> to vector<128x4xbf16>
    %c1_i32_15 = arith.constant 1 : i32
    %26 = arith.addi %0, %c1_i32_15 : i32
    %c0_16 = arith.constant 0 : index
    %27 = arith.index_cast %26 : i32 to index
    %c2_17 = arith.constant 2 : index
    %c0_18 = arith.constant 0 : index
    %28 = vector.load %arg2[%c0_16, %27, %c2_17, %c0_18] : memref<1x18x18x4xbf16, #tpu.memory_space<vmem>>, vector<1x8x16x4xbf16>
    %29 = vector.shape_cast %28 : vector<1x8x16x4xbf16> to vector<8x16x4xbf16>
    %30 = vector.shape_cast %29 : vector<8x16x4xbf16> to vector<128x4xbf16>
    %c2_i32 = arith.constant 2 : i32
    %31 = arith.addi %0, %c2_i32 : i32
    %c0_19 = arith.constant 0 : index
    %32 = arith.index_cast %31 : i32 to index
    %c0_20 = arith.constant 0 : index
    %c0_21 = arith.constant 0 : index
    %33 = vector.load %arg2[%c0_19, %32, %c0_20, %c0_21] : memref<1x18x18x4xbf16, #tpu.memory_space<vmem>>, vector<1x8x16x4xbf16>
    %34 = vector.shape_cast %33 : vector<1x8x16x4xbf16> to vector<8x16x4xbf16>
    %35 = vector.shape_cast %34 : vector<8x16x4xbf16> to vector<128x4xbf16>
    %c2_i32_22 = arith.constant 2 : i32
    %36 = arith.addi %0, %c2_i32_22 : i32
    %c0_23 = arith.constant 0 : index
    %37 = arith.index_cast %36 : i32 to index
    %c1_24 = arith.constant 1 : index
    %c0_25 = arith.constant 0 : index
    %38 = vector.load %arg2[%c0_23, %37, %c1_24, %c0_25] : memref<1x18x18x4xbf16, #tpu.memory_space<vmem>>, vector<1x8x16x4xbf16>
    %39 = vector.shape_cast %38 : vector<1x8x16x4xbf16> to vector<8x16x4xbf16>
    %40 = vector.shape_cast %39 : vector<8x16x4xbf16> to vector<128x4xbf16>
    %c2_i32_26 = arith.constant 2 : i32
    %41 = arith.addi %0, %c2_i32_26 : i32
    %c0_27 = arith.constant 0 : index
    %42 = arith.index_cast %41 : i32 to index
    %c2_28 = arith.constant 2 : index
    %c0_29 = arith.constant 0 : index
    %43 = vector.load %arg2[%c0_27, %42, %c2_28, %c0_29] : memref<1x18x18x4xbf16, #tpu.memory_space<vmem>>, vector<1x8x16x4xbf16>
    %44 = vector.shape_cast %43 : vector<1x8x16x4xbf16> to vector<8x16x4xbf16>
    %45 = vector.shape_cast %44 : vector<8x16x4xbf16> to vector<128x4xbf16>
    %cst = arith.constant 0.000000e+00 : bf16
    %46 = vector.broadcast %cst : bf16 to vector<128x4xbf16>
    %47 = tpu.concatenate %5, %10, %15, %20, %25, %30, %35, %40, %45, %46 in 1 : vector<128x4xbf16>, vector<128x4xbf16>, vector<128x4xbf16>, vector<128x4xbf16>, vector<128x4xbf16>, vector<128x4xbf16>, vector<128x4xbf16>, vector<128x4xbf16>, vector<128x4xbf16>, vector<128x4xbf16> -> vector<128x40xbf16>
    %c0_30 = arith.constant 0 : index
    %c0_31 = arith.constant 0 : index
    %48 = vector.load %arg3[%c0_30, %c0_31] : memref<40x128xbf16, #tpu.memory_space<vmem>>, vector<40x128xbf16>
    %cst_32 = arith.constant dense<0.000000e+00> : vector<128x128xf32>
    %49 = tpu.matmul %47, %48, %cst_32 {dimension_numbers = #tpu.dot_dimension_numbers<[1], [0], [0], [1], [0, 0, 1, 1], [], []>} : vector<128x40xbf16>, vector<40x128xbf16>, vector<128x128xf32> -> vector<128x128xf32>
    %c0_33 = arith.constant 0 : index
    %c0_34 = arith.constant 0 : index
    %c0_35 = arith.constant 0 : index
    %50 = vector.load %arg4[%c0_33, %c0_34, %c0_35] : memref<1x128x128xf32, #tpu.memory_space<vmem>>, vector<1x128x128xf32>
    %51 = vector.shape_cast %50 : vector<1x128x128xf32> to vector<128x128xf32>
    %52 = vector.shape_cast %49 : vector<128x128xf32> to vector<1x128x128xf32>
    tpu.vector_store %arg4[%c0_33, %c0_34, %c0_35], %52 {strides = array<i32>} : memref<1x128x128xf32, #tpu.memory_space<vmem>>, vector<1x128x128xf32>,
    %cst_36 = arith.constant dense<0.000000e+00> : vector<128xf32>
    %53 = vector.multi_reduction <add>, %49, %cst_36 [0] : vector<128x128xf32> to vector<128xf32>
    %54 = vector.shape_cast %53 : vector<128xf32> to vector<1x128xf32>
    %55 = arith.mulf %49, %49 : vector<128x128xf32>
    %cst_37 = arith.constant dense<0.000000e+00> : vector<128xf32>
    %56 = vector.multi_reduction <add>, %55, %cst_37 [0] : vector<128x128xf32> to vector<128xf32>
    %57 = vector.shape_cast %56 : vector<128xf32> to vector<1x128xf32>
    %58 = tpu.concatenate %54, %57 in 0 : vector<1x128xf32>, vector<1x128xf32> -> vector<2x128xf32>
    %c0_38 = arith.constant 0 : index
    %c0_39 = arith.constant 0 : index
    %c0_40 = arith.constant 0 : index
    %c0_41 = arith.constant 0 : index
    %59 = vector.load %arg5[%c0_38, %c0_39, %c0_40, %c0_41] : memref<1x1x2x128xf32, #tpu.memory_space<vmem>>, vector<1x1x2x128xf32>
    %60 = vector.shape_cast %59 : vector<1x1x2x128xf32> to vector<2x128xf32>
    %61 = vector.shape_cast %58 : vector<2x128xf32> to vector<1x1x2x128xf32>
    tpu.vector_store %arg5[%c0_38, %c0_39, %c0_40, %c0_41], %61 {strides = array<i32>} : memref<1x1x2x128xf32, #tpu.memory_space<vmem>>, vector<1x1x2x128xf32>,
    return
  }
  func.func @transform_0(%arg0: i32, %arg1: i32) -> (i32, i32, i32, i32) {
    %c0_i32 = arith.constant 0 : i32
    %c0_i32_0 = arith.constant 0 : i32
    %c0_i32_1 = arith.constant 0 : i32
    %c0_i32_2 = arith.constant 0 : i32
    return %arg0, %c0_i32, %c0_i32_0, %c0_i32_1 : i32, i32, i32, i32
  }
  func.func @transform_1(%arg0: i32, %arg1: i32) -> (i32, i32) {
    %c0_i32 = arith.constant 0 : i32
    %c0_i32_0 = arith.constant 0 : i32
    %c0_i32_1 = arith.constant 0 : i32
    return %c0_i32, %c0_i32_0 : i32, i32
  }
  func.func @transform_2(%arg0: i32, %arg1: i32) -> (i32, i32, i32) {
    %c0_i32 = arith.constant 0 : i32
    %c0_i32_0 = arith.constant 0 : i32
    return %arg0, %arg1, %c0_i32 : i32, i32, i32
  }
  func.func @transform_3(%arg0: i32, %arg1: i32) -> (i32, i32, i32, i32) {
    %c0_i32 = arith.constant 0 : i32
    %c0_i32_0 = arith.constant 0 : i32
    %c0_i32_1 = arith.constant 0 : i32
    return %arg0, %arg1, %c0_i32, %c0_i32_0 : i32, i32, i32, i32
  }
}

</mosaic_0001>

<bundles_post_ra>
// kernel: tpu_custom_call.1
= control target key start
LH: loop header
LB: loop body
LE: loop exit
PB: predicated region body
PF: predicated region fallthrough
CT: control target
= control target key end

     0   :  { %9 = vsyncpa [#allocation3], 0  ;;  %s3408_s0 = inlined_call_operand.vmem [shape: bf16[2,18,18,4], index: 0, kind: input, shape index: {}]   ;;  %s3409_s1 = inlined_call_operand.vmem [shape: bf16[40,128], index: 1, kind: input, shape index: {}]   ;;  %s3410_s2 = inlined_call_operand.hbm [shape: f32[2,256,128], index: 2, kind: output, shape index: {0}]   ;;  %s3411_s3 = inlined_call_operand.hbm [shape: f32[2,2,2,128], index: 3, kind: output, shape index: {1}]  }
   0x1   :  { %11 = vsyncpa [#allocation3 + $0x1], 0 }
   0x2   :  { %12 = vsyncpa [#allocation5], 0 }
   0x3   :  { %14 = vsyncpa [#allocation5 + $0x1], 0  ;;  %s2480_s12 = smov 0   ;;  %s2482_s13 = smov 0  }
   0x4   :  { %s2484_s14 = smov 0   ;;  %s2486_s15 = smov 0  }
   0x5   :  { %s2488_s16 = smov 0   ;;  %s2490_s17 = smov 0  }
   0x6   :  { %s2492_s18 = smov 0   ;;  %s2494_s19 = smov 0  }
   0x7 LB: > { %s1977_s20 = sadd.s32 4294967295, %s2449_s19   ;;  %s1978_s21 = sadd.s32 4294967294, %s2449_s19   ;;  %s2449_s19 = sphi %s2494_s19, %s20_s19   ;;  %s2445_s18 = sphi %s2492_s18, %s3424_s18   ;;  %s2441_s17 = sphi %s2490_s17, %s3423_s17   ;;  %s2437_s16 = sphi %s2488_s16, %s3422_s16   ;;  %s2433_s15 = sphi %s2486_s15, %s3421_s15   ;;  %s2429_s14 = sphi %s2484_s14, %s3420_s14   ;;  %s2425_s13 = sphi %s2482_s13, %s3419_s13   ;;  %s2421_s12 = sphi %s2480_s12, %s3418_s12  }
   0x8   : > { %s29_s22 = sadd.s32 1, %s2441_s17  ;;  %s32_s23 = sadd.s32 1, %s2445_s18 }
   0x9   : > { %p30_p0 = scmp.ge.s32.totalorder %s29_s22, 2  ;;  %p98_p1 = scmp.ne.s32.totalorder %s2429_s14, %s2425_s13 }
   0xa   : > { %p99_p2 = scmp.eq.s32.totalorder %s1977_s20, 3  ;;  %p104_p5 = scmp.ne.s32.totalorder %s2425_s13, %s2421_s12 }
   0xb   : > { %s3426_s22 = smov (%p30_p0, %s29_s22), 0  ;;  %s3428_s23 = smov (!%p30_p0, %s32_s23), %s2445_s18 }
   0xc   : > { %s84_s24 = ssub.s32 %s2441_s17, %s3426_s22  ;;  %p2531_p3 = por %p99_p2, %p98_p1 }
   0xd   : > { %p34_p4 = scmp.ge.s32.totalorder %s3428_s23, 2  ;;  %p105_p6 = scmp.eq.s32.totalorder %s1978_s21, 3 }
   0xe   : > { %p1981_p7 = scmp.ge.s32.totalorder %s2449_s19, 1  ;;  %p162_p9 = scmp.lt.s32.totalorder %s2449_s19, 5 }
   0xf   : > { %s3430_s23 = smov (%p34_p4, %s3428_s23), 0  ;;  %p2540_p8 = por %p105_p6, %p104_p5 }
  0x10   : > { %s83_s27 = ssub.s32 %s2445_s18, %s3430_s23  ;;  %s88_s28 = sadd.s32 1, %s2429_s14 }
  0x11   : > { %s85_s29 = sor.u32 %s84_s24, %s83_s27  ;;  %p163_p10 = pnand %p1981_p7, %p162_p9 }
  0x12   : > { %p86_p11 = scmp.eq.s32.totalorder %s85_s29, 0  ;;  %p191_p12 = scmp.lt.s32.totalorder (!%p163_p10), %s2437_s16, 1 }
  0x13   : > { %166 = sbr.rel (%p163_p10) target bundleno = 486 (0x1e6), region = 28  ;;  %s2451_s11 = smov (!%p163_p10), 12  }
  0x14   : > { %s2549_s30 = scalar_select %p86_p11, %s2429_s14, %s88_s28  }
  0x15   : > { %s2201_s5 = smul.u32 (!%p163_p10), 96, %s2433_s15  ;;  %s2452_s20 = smov (!%p163_p10), 24  }
  0x16   : > { %s2453_s21 = smov (!%p163_p10), 8   ;;  %s2454_s24 = smov (!%p163_p10), 32  }
  0x17   : > { %s2455_s27 = smov (!%p163_p10), 4   ;;  %s2456_s28 = smov (!%p163_p10), 16  }
  0x18   : > { %s192_s4 = scalar_select %p191_p12, %s2437_s16, 1  ;;  %vm453_vm0 = vcmask 1042432   ;;  %vm454_vm1 = vcmask 1046532   ;;  %vm226_vm2 = vsmask.f32 3328  ;;  %vm1687_vm6 = vcmask 1043456  }
  0x19   : > { %vm227_vm3 = vsmask.f32 7440  ;;  %vm2563_vm4 = vmor %vm453_vm0, %vm454_vm1  ;;  %s2457_s29 = smov 28   ;;  %vm1496_vm7 = vcmask 31744   ;;  %vm1521_vm8 = vcmask 64512   ;;  %vm1538_vm9 = vcmask 97280  }
  0x1a   : > { %s2237_s6 = smul.u32 216, %s192_s4  ;;  %vm2594_vm5 = vmor %vm226_vm2, %vm227_vm3  ;;  %s2458_s4 = smov 20   ;;  %vm1555_vm10 = vcmask 130048   ;;  %vm1572_vm11 = vcmask 162816   ;;  %vm1589_vm12 = vcmask 195584   ;;  %vm1606_vm13 = vcmask 228352  }
  0x1b   : > { %vm1623_vm14 = vcmask 261120   ;;  %vm1640_vm15 = vcmask 293888   ;;  %vm1670_vm0 = vcmask 326656  }
  0x1c   : > { %s195_s9 = scalar_lea.vmem %s3408_s0, %s2237_s6 }
  0x1d   : > { %s2557_s10 = scalar_lea.vmem %s195_s9, %s2201_s5  ;;  %s2197_s5 = sshll.u32 %s2437_s16, 1 }
  0x1e   : > { %v2210_v0 = vld [vmem:[%s2557_s10 + $0xc] sm:$0xff]  ;;  %v203_v1 = vld [vmem:[%s2557_s10 + $0x4] sm:$0xf]  ;;  %v218_v2 = vld [vmem:[%s2557_s10 + $0x8] sm:$0x1] }
  0x1f   : > { %v249_v3 = vshll.u32 %v218_v2, 16  ;;  %v421_v4 = vld [vmem:[%s2557_s10] sm:$0xe]  ;;  %v458_v6 = vrot.slane %v203_v1, 5  ;;  %v461_v7 = vrot.slane %v218_v2, 5  ;;  %v243_v8 = vshrl.u32 %v203_v1, 16  ;;  %1272 = vrot.lane.b32.xlu1 %v2210_v0, %s2451_s11 }
  0x20   : > { %v1988_v9 = vrot.slane %v421_v4, 9  ;;  %v2569_v10 = vld [vmem:[%s2557_s10 + $0x1c] sm:$0xf]  ;;  %v2572_v11 = vld [vmem:[%s2557_s10 + $0x20] sm:$0x1]  ;;  %v239_v12 = vshll.u32 %v203_v1, 16 }
  0x21   : > { %v460_v13 = vrot.slane %v458_v6, 4  ;;  %v2064_v14 = vld [vmem:[%s2557_s10 + $0x18] sm:$0xe]  ;;  %v1074_v15 = vrot.slane %v2569_v10, 5  ;;  %v1077_v16 = vrot.slane %v2572_v11, 5  ;;  %v245_v17 = vrot.slane %v243_v8, 4 }
  0x22   : > { %v459_v18 = vsel %vm2563_vm4, %v1988_v9, %v458_v6  ;;  %v2072_v19 = vrot.slane %v2064_v14, 9  ;;  %v202_v20 = vld [vmem:[%s2557_s10] sm:$0xf]  ;;  %v241_v21 = vrot.slane %v239_v12, 5  ;;  %v251_v22 = vrot.slane %v249_v3, 5  ;;  %v2218_v23 = vld [vmem:[%s2557_s10 + $0x18] sm:$0xff] }
  0x23   : > { %v462_v24 = vsel %vm2563_vm4, %v460_v13, %v461_v7  ;;  %v1200_v25 = vunpack.c.l.b16 %v459_v18  ;;  %v1076_v26 = vrot.slane %v1074_v15, 4  ;;  %v230_v27 = vshrl.u32 %v202_v20, 16  ;;  %v1998_v28 = vld [vmem:[%s2557_s10 + $0xc] sm:$0xf]  ;;  %v2587_v33 = vld [vmem:[%s2557_s10 + $0x10] sm:$0xf]  ;;  %1400 = vrot.lane.b32.xlu2 %v2218_v23, %s2452_s20 }
  0x24   : > { %v1201_v29 = vunpack.c.l.b16 %v462_v24  ;;  %v1075_v30 = vsel %vm2563_vm4, %v2072_v19, %v1074_v15  ;;  %v233_v31 = vshll.u32 %v202_v20, 16  ;;  %v246_v32 = vor.u32 %v245_v17, %v241_v21  ;;  %v2599_v38 = vld [vmem:[%s2557_s10 + $0x14] sm:$0x1]  ;;  %v2040_v48 = vld [vmem:[%s2557_s10 + $0x18] sm:$0xf] }
  0x25   : > { %v1078_v34 = vsel %vm2563_vm4, %v1076_v26, %v1077_v16  ;;  %v1456_v35 = vunpack.c.l.b16 %v1075_v30  ;;  %v232_v37 = vrot.slane %v230_v27, 4  ;;  %v541_v39 = vshrl.u32 %v1998_v28, 16  ;;  %v210_v1 = vld [vmem:[%s2557_s10 + $0x30] sm:$0xf]  ;;  %v2616_v16 = vld [vmem:[%s2557_s10 + $0x34] sm:$0xf] }
  0x26   : > { %v1216_v40 = vpack.c.b16 %v1201_v29, %v1200_v25  ;;  %v1457_v41 = vunpack.c.l.b16 %v1078_v34  ;;  %v235_v42 = vrot.slane %v233_v31, 5  ;;  %v247_v43 = vrot.slane %v246_v32, 4  ;;  %v2626_v25 = vld [vmem:[%s2557_s10 + $0x1c] sm:$0xf]  ;;  %v423_v30 = vld [vmem:[%s2557_s10 + $0x18] sm:$0xe] }
  0x27   : > { %v543_v44 = vrot.slane %v541_v39, 4  ;;  %v544_v45 = vshll.u32 %v1998_v28, 16  ;;  %v550_v46 = vshll.u32 %v2587_v33, 16  ;;  %v554_v47 = vshrl.u32 %v2587_v33, 16 }
  0x28   : > { %1224 = vrot.lane.b32.xlu0 %v1216_v40, %s2453_s21  ;;  %v1472_v49 = vpack.c.b16 %v1457_v41, %v1456_v35  ;;  %v236_v50 = vor.u32 %v235_v42, %v232_v37  ;;  %v252_v51 = vsel %vm2594_vm5, %v247_v43, %v251_v22  ;;  %v560_v52 = vshll.u32 %v2599_v38, 16  ;;  %v2636_v37 = vld [vmem:[%s2557_s10 + $0x20] sm:$0x1]  ;;  %v2002_v43 = vld [vmem:[%s2557_s10 + $0x24] sm:$0xf] }
  0x29   : > { %v1161_v53 = vunpack.c.l.b16 %v252_v51  ;;  %v546_v54 = vrot.slane %v544_v45, 5  ;;  %v552_v55 = vrot.slane %v550_v46, 5  ;;  %v556_v56 = vrot.slane %v554_v47, 4 }
  0x2a   : > { %1480 = vrot.lane.b32.xlu1 %v1472_v49, %s2454_s24  ;;  %v237_v57 = vrot.slane %v236_v50, 4  ;;  %v562_v58 = vrot.slane %v560_v52, 5  ;;  %v849_v59 = vshrl.u32 %v2040_v48, 16  ;;  %v852_v60 = vshll.u32 %v2040_v48, 16 }
  0x2b   : > { %v547_v61 = vor.u32 %v546_v54, %v543_v44  ;;  %v557_v62 = vor.u32 %v556_v56, %v552_v55  ;;  %v858_v63 = vshll.u32 %v2569_v10, 16  ;;  %v862_v0 = vshrl.u32 %v2569_v10, 16  ;;  %v2647_v54 = vld [vmem:[%s2557_s10 + $0x28] sm:$0xf] }
  0x2c   : > { %v242_v2 = vsel %vm2594_vm5, %v237_v57, %v241_v21  ;;  %v851_v3 = vrot.slane %v849_v59, 4  ;;  %v854_v4 = vrot.slane %v852_v60, 5  ;;  %v868_v6 = vshll.u32 %v2572_v11, 16  ;;  %v2623_v11 = vld [vmem:[%s2557_s10 + $0x38] sm:$0x1] }
  0x2d   : > { %v1160_v7 = vunpack.c.l.b16 %v242_v2  ;;  %v548_v8 = vrot.slane %v547_v61, 4  ;;  %v558_v9 = vrot.slane %v557_v62, 4  ;;  %v860_v12 = vrot.slane %v858_v63, 5  ;;  %v2652_v61 = vld [vmem:[%s2557_s10 + $0x2c] sm:$0x1] }
  0x2e   : > { %v855_v13 = vor.u32 %v854_v4, %v851_v3  ;;  %v864_v14 = vrot.slane %v862_v0, 4  ;;  %v870_v15 = vrot.slane %v868_v6, 5  ;;  %v326_v10 = vshrl.u32 %v210_v1, 16  ;;  %v2022_v62 = vld [vmem:[%s2557_s10 + $0xc] sm:$0xe] }
  0x2f   : > { %v1176_v17 = vpack.c.b16 %v1161_v53, %v1160_v7  ;;  %v553_v18 = vsel %vm2594_vm5, %v548_v8, %v552_v55  ;;  %v563_v19 = vsel %vm2594_vm5, %v558_v9, %v562_v58  ;;  %v329_v20 = vshll.u32 %v210_v1, 16 }
  0x30   : > { %v1288_v21 = vunpack.c.l.b16 %v553_v18  ;;  %v1289_v22 = vunpack.c.l.b16 %v563_v19  ;;  %v856_v23 = vrot.slane %v855_v13, 4  ;;  %v865_v24 = vor.u32 %v864_v14, %v860_v12  ;;  %v425_v14 = vld [vmem:[%s2557_s10 + $0x30] sm:$0xe] }
  0x31   : > { %1184 = vrot.lane.b32.xlu0 %v1176_v17, %s2455_s27  ;;  %v328_v26 = vrot.slane %v326_v10, 4  ;;  %v331_v27 = vrot.slane %v329_v20, 5  ;;  %v335_v28 = vshll.u32 %v2616_v16, 16  ;;  %v339_v29 = vshrl.u32 %v2616_v16, 16 }
  0x32   : > { %v1304_v31 = vpack.c.b16 %v1289_v22, %v1288_v21  ;;  %v861_v32 = vsel %vm2594_vm5, %v856_v23, %v860_v12  ;;  %v866_v34 = vrot.slane %v865_v24, 4  ;;  %v345_v35 = vshll.u32 %v2623_v11, 16  ;;  %v2006_v23 = vld [vmem:[%s2557_s10 + $0x3c] sm:$0xf] }
  0x33   : > { %v1416_v39 = vunpack.c.l.b16 %v861_v32  ;;  %v332_v40 = vor.u32 %v331_v27, %v328_v26  ;;  %v337_v41 = vrot.slane %v335_v28, 5  ;;  %v341_v42 = vrot.slane %v339_v29, 4 }
  0x34   : > { %1312 = vrot.lane.b32.xlu1 %v1304_v31, %s2456_s28  ;;  %v871_v44 = vsel %vm2594_vm5, %v866_v34, %v870_v15  ;;  %v347_v45 = vrot.slane %v345_v35, 5  ;;  %v1990_v46 = vrot.slane %v423_v30, 9  ;;  %v472_v47 = vrot.slane %v2626_v25, 5 }
  0x35   : > { %v1417_v48 = vunpack.c.l.b16 %v871_v44  ;;  %v333_v49 = vrot.slane %v332_v40, 4  ;;  %v342_v50 = vor.u32 %v341_v42, %v337_v41  ;;  %v475_v51 = vrot.slane %v2636_v37, 5 }
  0x36   : > { %v473_v52 = vsel %vm2563_vm4, %v1990_v46, %v472_v47  ;;  %v474_v53 = vrot.slane %v472_v47, 4  ;;  %v589_v55 = vshrl.u32 %v2002_v43, 16  ;;  %v592_v56 = vshll.u32 %v2002_v43, 16  ;;  %v2682_v43 = vld [vmem:[%s2557_s10 + $0x44] sm:$0x1] }
  0x37   : > { %v1432_v57 = vpack.c.b16 %v1417_v48, %v1416_v39  ;;  %v338_v58 = vsel %vm2594_vm5, %v333_v49, %v337_v41  ;;  %v343_v59 = vrot.slane %v342_v50, 4  ;;  %v1204_v60 = vunpack.c.l.b16 %v473_v52  ;;  %v206_v47 = vld [vmem:[%s2557_s10 + $0x18] sm:$0xf] }
  0x38   : > { %v1168_v63 = vunpack.c.l.b16 %v338_v58  ;;  %v476_v0 = vsel %vm2563_vm4, %v474_v53, %v475_v51  ;;  %v591_v1 = vrot.slane %v589_v55, 4  ;;  %v594_v2 = vrot.slane %v592_v56, 5 }
  0x39   : > { %1440 = vrot.lane.b32.xlu0 %v1432_v57, %s2457_s29  ;;  %v348_v3 = vsel %vm2594_vm5, %v343_v59, %v347_v45  ;;  %v1205_v4 = vunpack.c.l.b16 %v476_v0  ;;  %v598_v6 = vshll.u32 %v2647_v54, 16  ;;  %v602_v7 = vshrl.u32 %v2647_v54, 16 }
  0x3a   : > { %v1169_v8 = vunpack.c.l.b16 %v348_v3  ;;  %v595_v9 = vor.u32 %v594_v2, %v591_v1  ;;  %v608_v12 = vshll.u32 %v2652_v61, 16  ;;  %v2030_v13 = vrot.slane %v2022_v62, 9  ;;  %v2024_v62 = vld [vmem:[%s2557_s10 + $0x24] sm:$0xe] }
  0x3b   : > { %v1218_v15 = vpack.c.b16 %v1205_v4, %v1204_v60  ;;  %v600_v10 = vrot.slane %v598_v6, 5  ;;  %v604_v17 = vrot.slane %v602_v7, 4  ;;  %v766_v18 = vrot.slane %v2587_v33, 5 }
  0x3c   : > { %v1180_v19 = vpack.c.b16 %v1169_v8, %v1168_v63  ;;  %v596_v20 = vrot.slane %v595_v9, 4  ;;  %v610_v21 = vrot.slane %v608_v12, 5  ;;  %v769_v22 = vrot.slane %v2599_v38, 5  ;;  %v2675_v38 = vld [vmem:[%s2557_s10 + $0x40] sm:$0xf] }
  0x3d   : > { %v605_v24 = vor.u32 %v604_v17, %v600_v10  ;;  %v767_v26 = vsel %vm2563_vm4, %v2030_v13, %v766_v18  ;;  %v768_v27 = vrot.slane %v766_v18, 4  ;;  %v1992_v28 = vrot.slane %v425_v14, 9  ;;  %v2044_v18 = vld [vmem:[%s2557_s10 + $0x30] sm:$0xf] }
  0x3e   : > { %1192 = vrot.lane.b32.xlu1 %v1180_v19, %s2455_s27  ;;  %v601_v29 = vsel %vm2594_vm5, %v596_v20, %v600_v10  ;;  %v1328_v30 = vunpack.c.l.b16 %v767_v26  ;;  %v486_v33 = vrot.slane %v2616_v16, 5  ;;  %v489_v31 = vrot.slane %v2623_v11, 5 }
  0x3f   : > { %v606_v32 = vrot.slane %v605_v24, 4  ;;  %v1292_v34 = vunpack.c.l.b16 %v601_v29  ;;  %v770_v35 = vsel %vm2563_vm4, %v768_v27, %v769_v22  ;;  %v637_v39 = vshrl.u32 %v2006_v23, 16  ;;  %v2710_v27 = vld [vmem:[%s2557_s10 + $0x34] sm:$0xf] }
  0x40   : > { %v1329_v40 = vunpack.c.l.b16 %v770_v35  ;;  %v487_v41 = vsel %vm2563_vm4, %v1992_v28, %v486_v33  ;;  %v488_v42 = vrot.slane %v486_v33, 4  ;;  %v640_v44 = vshll.u32 %v2006_v23, 16 }
  0x41   : > { %1228 = vrot.lane.b32.xlu0 %v1218_v15, %s2453_s21  ;;  %v611_v16 = vsel %vm2594_vm5, %v606_v32, %v610_v21  ;;  %v1208_v11 = vunpack.c.l.b16 %v487_v41  ;;  %v639_v45 = vrot.slane %v637_v39, 4  ;;  %v646_v46 = vshll.u32 %v2675_v38, 16  ;;  %v2717_v32 = vld [vmem:[%s2557_s10 + $0x38] sm:$0x1]  ;;  %v2026_v41 = vld [vmem:[%s2557_s10 + $0x3c] sm:$0xe] }
  0x42   : > { %v1293_v48 = vunpack.c.l.b16 %v611_v16  ;;  %v1344_v49 = vpack.c.b16 %v1329_v40, %v1328_v30  ;;  %v490_v50 = vsel %vm2563_vm4, %v488_v42, %v489_v31  ;;  %v642_v51 = vrot.slane %v640_v44, 5 }
  0x43   : > { %v1209_v52 = vunpack.c.l.b16 %v490_v50  ;;  %v648_v53 = vrot.slane %v646_v46, 5  ;;  %v650_v55 = vshrl.u32 %v2675_v38, 16  ;;  %v656_v56 = vshll.u32 %v2682_v43, 16 }
  0x44   : > { %v1306_v57 = vpack.c.b16 %v1293_v48, %v1292_v34  ;;  %1352 = vrot.lane.b32.xlu2 %v1344_v49, %s2458_s4  ;;  %v643_v58 = vor.u32 %v642_v51, %v639_v45  ;;  %v278_v59 = vshrl.u32 %v206_v47, 16  ;;  %v281_v60 = vshll.u32 %v206_v47, 16  ;;  %v204_v49 = vld [vmem:[%s2557_s10 + $0xc] sm:$0xf] }
  0x45   : > { %v1220_v63 = vpack.c.b16 %v1209_v52, %v1208_v11  ;;  %v652_v0 = vrot.slane %v650_v55, 4  ;;  %v658_v1 = vrot.slane %v656_v56, 5  ;;  %v287_v2 = vshll.u32 %v2626_v25, 16  ;;  %v2729_v55 = vld [vmem:[%s2557_s10 + $0x10] sm:$0xf] }
  0x46   : > { %1316 = vrot.lane.b32.xlu1 %v1306_v57, %s2456_s28  ;;  %v644_v3 = vrot.slane %v643_v58, 4  ;;  %v280_v4 = vrot.slane %v278_v59, 4  ;;  %v283_v6 = vrot.slane %v281_v60, 5  ;;  %v291_v7 = vshrl.u32 %v2626_v25, 16 }
  0x47   : > { %v653_v8 = vor.u32 %v652_v0, %v648_v53  ;;  %v289_v9 = vrot.slane %v287_v2, 5  ;;  %v297_v12 = vshll.u32 %v2636_v37, 16  ;;  %v2032_v13 = vrot.slane %v2024_v62, 9  ;;  %v2739_v2 = vld [vmem:[%s2557_s10 + $0x14] sm:$0x1] }
  0x48   : > { %v649_v14 = vsel %vm2594_vm5, %v644_v3, %v648_v53  ;;  %v284_v15 = vor.u32 %v283_v6, %v280_v4  ;;  %v293_v10 = vrot.slane %v291_v7, 4  ;;  %v780_v17 = vrot.slane %v2647_v54, 5 }
  0x49   : > { %1232 = vrot.lane.b32.xlu0 %v1220_v63, %s2453_s21  ;;  %v654_v19 = vrot.slane %v653_v8, 4  ;;  %v1296_v20 = vunpack.c.l.b16 %v649_v14  ;;  %v299_v25 = vrot.slane %v297_v12, 5  ;;  %v783_v21 = vrot.slane %v2652_v61, 5 }
  0x4a   : > { %v285_v22 = vrot.slane %v284_v15, 4  ;;  %v294_v37 = vor.u32 %v293_v10, %v289_v9  ;;  %v781_v23 = vsel %vm2563_vm4, %v2032_v13, %v780_v17  ;;  %v782_v24 = vrot.slane %v780_v17, 4 }
  0x4b   : > { %v659_v26 = vsel %vm2594_vm5, %v654_v19, %v658_v1  ;;  %v1332_v54 = vunpack.c.l.b16 %v781_v23  ;;  %v897_v28 = vshrl.u32 %v2044_v18, 16  ;;  %v900_v29 = vshll.u32 %v2044_v18, 16 }
  0x4c   : > { %v1297_v30 = vunpack.c.l.b16 %v659_v26  ;;  %v290_v33 = vsel %vm2594_vm5, %v285_v22, %v289_v9  ;;  %v295_v61 = vrot.slane %v294_v37, 4  ;;  %v784_v31 = vsel %vm2563_vm4, %v782_v24, %v783_v21  ;;  %v2212_v21 = vld [vmem:[%s2557_s10 + $0x24] sm:$0xff]  ;;  %v2755_v24 = vld [vmem:[%s2557_s10 + $0x50] sm:$0x1] }
  0x4d   : > { %v1164_v34 = vunpack.c.l.b16 %v290_v33  ;;  %v1333_v35 = vunpack.c.l.b16 %v784_v31  ;;  %v899_v39 = vrot.slane %v897_v28, 4  ;;  %v902_v40 = vrot.slane %v900_v29, 5  ;;  %v2068_v26 = vld [vmem:[%s2557_s10 + $0x48] sm:$0xe]  ;;  %v422_v33 = vld [vmem:[%s2557_s10 + $0xc] sm:$0xe] }
  0x4e   : > { %v1308_v42 = vpack.c.b16 %v1297_v30, %v1296_v20  ;;  %v300_v44 = vsel %vm2594_vm5, %v295_v61, %v299_v25  ;;  %v906_v16 = vshll.u32 %v2710_v27, 16  ;;  %v910_v11 = vshrl.u32 %v2710_v27, 16  ;;  %v2751_v20 = vld [vmem:[%s2557_s10 + $0x4c] sm:$0xf] }
  0x4f   : > { %v1165_v45 = vunpack.c.l.b16 %v300_v44  ;;  %v1346_v46 = vpack.c.b16 %v1333_v35, %v1332_v54  ;;  %v903_v47 = vor.u32 %v902_v40, %v899_v39  ;;  %v916_v48 = vshll.u32 %v2717_v32, 16 }
  0x50   : > { %1320 = vrot.lane.b32.xlu1 %v1308_v42, %s2456_s28  ;;  %v908_v50 = vrot.slane %v906_v16, 5  ;;  %v912_v51 = vrot.slane %v910_v11, 4  ;;  %v2034_v52 = vrot.slane %v2026_v41, 9  ;;  %v794_v53 = vrot.slane %v2675_v38, 5 }
  0x51   : > { %v1178_v56 = vpack.c.b16 %v1165_v45, %v1164_v34  ;;  %1356 = vrot.lane.b32.xlu0 %v1346_v46, %s2458_s4  ;;  %v904_v57 = vrot.slane %v903_v47, 4  ;;  %v918_v58 = vrot.slane %v916_v48, 5  ;;  %v797_v59 = vrot.slane %v2682_v43, 5  ;;  %v2066_v43 = vld [vmem:[%s2557_s10 + $0x30] sm:$0xe] }
  0x52   : > { %v913_v60 = vor.u32 %v912_v51, %v908_v50  ;;  %v795_v62 = vsel %vm2563_vm4, %v2034_v52, %v794_v53  ;;  %v796_v63 = vrot.slane %v794_v53, 4  ;;  %v254_v0 = vshrl.u32 %v204_v49, 16  ;;  %v2775_v48 = vld [vmem:[%s2557_s10 + $0x4c] sm:$0xf] }
  0x53   : > { %1188 = vrot.lane.b32.xlu2 %v1178_v56, %s2455_s27  ;;  %v909_v38 = vsel %vm2594_vm5, %v904_v57, %v908_v50  ;;  %v1336_v1 = vunpack.c.l.b16 %v795_v62  ;;  %v257_v3 = vshll.u32 %v204_v49, 16  ;;  %v263_v4 = vshll.u32 %v2729_v55, 16  ;;  %v427_v49 = vld [vmem:[%s2557_s10 + $0x48] sm:$0xe]  ;;  %v2782_v56 = vld [vmem:[%s2557_s10 + $0x50] sm:$0x1] }
  0x54   : > { %v914_v6 = vrot.slane %v913_v60, 4  ;;  %v1420_v7 = vunpack.c.l.b16 %v909_v38  ;;  %v798_v8 = vsel %vm2563_vm4, %v796_v63, %v797_v59  ;;  %v256_v9 = vrot.slane %v254_v0, 4  ;;  %v2023_v57 = vld [vmem:[%s2557_s10 + $0x18] sm:$0xe]  ;;  %v2214_v59 = vld [vmem:[%s2557_s10 + $0x3c] sm:$0xff] }
  0x55   : > { %v1337_v12 = vunpack.c.l.b16 %v798_v8  ;;  %v259_v13 = vrot.slane %v257_v3, 5  ;;  %v265_v14 = vrot.slane %v263_v4, 5  ;;  %v267_v15 = vshrl.u32 %v2729_v55, 16  ;;  %v2048_v63 = vld [vmem:[%s2557_s10 + $0x48] sm:$0xf] }
  0x56   : > { %v919_v10 = vsel %vm2594_vm5, %v914_v6, %v918_v58  ;;  %v273_v17 = vshll.u32 %v2739_v2, 16  ;;  %v2074_v18 = vrot.slane %v2066_v43, 9  ;;  %v1088_v19 = vrot.slane %v2710_v27, 5  ;;  %v2793_v3 = vld [vmem:[%s2557_s10 + $0x1c] sm:$0xf] }
  0x57   : > { %v1421_v25 = vunpack.c.l.b16 %v919_v10  ;;  %v1348_v22 = vpack.c.b16 %v1337_v12, %v1336_v1  ;;  %v260_v37 = vor.u32 %v259_v13, %v256_v9  ;;  %v269_v23 = vrot.slane %v267_v15, 4 }
  0x58   : > { %v275_v54 = vrot.slane %v273_v17, 5  ;;  %v1089_v28 = vsel %vm2563_vm4, %v2074_v18, %v1088_v19  ;;  %v1090_v29 = vrot.slane %v1088_v19, 4  ;;  %v1091_v30 = vrot.slane %v2717_v32, 5 }
  0x59   : > { %v1434_v61 = vpack.c.b16 %v1421_v25, %v1420_v7  ;;  %1360 = vrot.lane.b32.xlu0 %v1348_v22, %s2458_s4  ;;  %v261_v27 = vrot.slane %v260_v37, 4  ;;  %v270_v31 = vor.u32 %v269_v23, %v265_v14  ;;  %v1460_v34 = vunpack.c.l.b16 %v1089_v28  ;;  %v2028_v22 = vld [vmem:[%s2557_s10 + $0x54] sm:$0xe]  ;;  %v2815_v28 = vld [vmem:[%s2557_s10 + $0x58] sm:$0xf] }
  0x5a   : > { %v1092_v35 = vsel %vm2563_vm4, %v1090_v29, %v1091_v30  ;;  %v2076_v39 = vrot.slane %v2068_v26, 9  ;;  %v1102_v40 = vrot.slane %v2751_v20, 5  ;;  %v1105_v41 = vrot.slane %v2755_v24, 5  ;;  %v2818_v29 = vld [vmem:[%s2557_s10 + $0x5c] sm:$0x1] }
  0x5b   : > { %1444 = vrot.lane.b32.xlu1 %v1434_v61, %s2457_s29  ;;  %1276 = vrot.lane.b32.xlu2 %v2212_v21, %s2451_s11  ;;  %v266_v32 = vsel %vm2594_vm5, %v261_v27, %v265_v14  ;;  %v271_v42 = vrot.slane %v270_v31, 4  ;;  %v1461_v44 = vunpack.c.l.b16 %v1092_v35  ;;  %v1989_v16 = vrot.slane %v422_v33, 9  ;;  %v214_v31 = vld [vmem:[%s2557_s10 + $0x48] sm:$0xf] }
  0x5c   : > { %v1162_v11 = vunpack.c.l.b16 %v266_v32  ;;  %v1103_v45 = vsel %vm2563_vm4, %v2076_v39, %v1102_v40  ;;  %v1104_v46 = vrot.slane %v1102_v40, 4  ;;  %v465_v47 = vrot.slane %v2729_v55, 5 }
  0x5d   : > { %v276_v50 = vsel %vm2594_vm5, %v271_v42, %v275_v54  ;;  %v1474_v51 = vpack.c.b16 %v1461_v44, %v1460_v34  ;;  %v1464_v52 = vunpack.c.l.b16 %v1103_v45  ;;  %v468_v53 = vrot.slane %v2739_v2, 5  ;;  %v2796_v2 = vld [vmem:[%s2557_s10 + $0x20] sm:$0x1] }
  0x5e   : > { %v1163_v58 = vunpack.c.l.b16 %v276_v50  ;;  %v1106_v55 = vsel %vm2563_vm4, %v1104_v46, %v1105_v41  ;;  %v466_v60 = vsel %vm2563_vm4, %v1989_v16, %v465_v47  ;;  %v467_v62 = vrot.slane %v465_v47, 4  ;;  %v2220_v41 = vld [vmem:[%s2557_s10 + $0x30] sm:$0xff] }
  0x5f   : > { %v1465_v0 = vunpack.c.l.b16 %v1106_v55  ;;  %v1994_v38 = vrot.slane %v427_v49, 9  ;;  %v500_v1 = vrot.slane %v2775_v48, 5  ;;  %v503_v6 = vrot.slane %v2782_v56, 5 }
  0x60   : > { %v1177_v4 = vpack.c.b16 %v1163_v58, %v1162_v11  ;;  %v469_v43 = vsel %vm2563_vm4, %v467_v62, %v468_v53  ;;  %v2031_v7 = vrot.slane %v2023_v57, 9  ;;  %v1202_v8 = vunpack.c.l.b16 %v466_v60  ;;  %v2065_v62 = vld [vmem:[%s2557_s10 + $0x24] sm:$0xe] }
  0x61   : > { %1484 = vrot.lane.b32.xlu0 %v1474_v51, %s2454_s24  ;;  %v1203_v9 = vunpack.c.l.b16 %v469_v43  ;;  %v501_v12 = vsel %vm2563_vm4, %v1994_v38, %v500_v1  ;;  %v502_v13 = vrot.slane %v500_v1, 4  ;;  %v1476_v14 = vpack.c.b16 %v1465_v0, %v1464_v52  ;;  %v2847_v43 = vld [vmem:[%s2557_s10 + $0x2c] sm:$0x1] }
  0x62   : > { %v773_v15 = vrot.slane %v2793_v3, 5  ;;  %v776_v10 = vrot.slane %v2796_v2, 5  ;;  %v945_v17 = vshrl.u32 %v2048_v63, 16  ;;  %v1212_v19 = vunpack.c.l.b16 %v501_v12  ;;  %v2000_v12 = vld [vmem:[%s2557_s10 + $0x18] sm:$0xf] }
  0x63   : > { %1186 = vrot.lane.b32.xlu1 %v1177_v4, %s2455_s27  ;;  %1280 = vrot.lane.b32.xlu2 %v2214_v59, %s2451_s11  ;;  %v504_v18 = vsel %vm2563_vm4, %v502_v13, %v503_v6  ;;  %v948_v25 = vshll.u32 %v2048_v63, 16  ;;  %v954_v21 = vshll.u32 %v2751_v20, 16  ;;  %v1217_v30 = vpack.c.b16 %v1203_v9, %v1202_v8  ;;  %v2844_v4 = vld [vmem:[%s2557_s10 + $0x28] sm:$0xf]  ;;  %v2211_v6 = vld [vmem:[%s2557_s10 + $0x18] sm:$0xff] }
  0x64   : > { %v1213_v37 = vunpack.c.l.b16 %v504_v18  ;;  %v774_v23 = vsel %vm2563_vm4, %v2031_v7, %v773_v15  ;;  %v775_v26 = vrot.slane %v773_v15, 4  ;;  %v947_v54 = vrot.slane %v945_v17, 4 }
  0x65   : > { %v950_v33 = vrot.slane %v948_v25, 5  ;;  %v956_v61 = vrot.slane %v954_v21, 5  ;;  %v958_v27 = vshrl.u32 %v2751_v20, 16  ;;  %v1330_v35 = vunpack.c.l.b16 %v774_v23 }
  0x66   : > { %v777_v34 = vsel %vm2563_vm4, %v775_v26, %v776_v10  ;;  %v964_v39 = vshll.u32 %v2755_v24, 16  ;;  %v2036_v40 = vrot.slane %v2028_v22, 9  ;;  %v808_v16 = vrot.slane %v2815_v28, 5 }
  0x67   : > { %v1331_v32 = vunpack.c.l.b16 %v777_v34  ;;  %v951_v42 = vor.u32 %v950_v33, %v947_v54  ;;  %v960_v44 = vrot.slane %v958_v27, 4  ;;  %v1222_v11 = vpack.c.b16 %v1213_v37, %v1212_v19 }
  0x68   : > { %v811_v45 = vrot.slane %v2818_v29, 5  ;;  %v374_v46 = vshrl.u32 %v214_v31, 16  ;;  %v377_v47 = vshll.u32 %v214_v31, 16  ;;  %v966_v50 = vrot.slane %v964_v39, 5  ;;  %v424_v39 = vld [vmem:[%s2557_s10 + $0x24] sm:$0xe] }
  0x69   : > { %1226 = vrot.lane.b32.xlu0 %v1217_v30, %s2453_s21  ;;  %v952_v20 = vrot.slane %v951_v42, 4  ;;  %v961_v49 = vor.u32 %v960_v44, %v956_v61  ;;  %v809_v24 = vsel %vm2563_vm4, %v2036_v40, %v808_v16  ;;  %v2831_v51 = vpack.c.b16 %v1331_v32, %v1330_v35  ;;  %v2883_v44 = vld [vmem:[%s2557_s10 + $0x2c] sm:$0x1] }
  0x6a   : > { %v810_v52 = vrot.slane %v808_v16, 4  ;;  %v376_v53 = vrot.slane %v374_v46, 4  ;;  %v379_v57 = vrot.slane %v377_v47, 5  ;;  %v383_v55 = vshll.u32 %v2775_v48, 16  ;;  %v2052_v47 = vld [vmem:[%s2557_s10 + $0x60] sm:$0xf] }
  0x6b   : > { %1488 = vrot.lane.b32.xlu1 %v1476_v14, %s2454_s24  ;;  %1404 = vrot.lane.b32.xlu2 %v2220_v41, %s2452_s20  ;;  %v957_v58 = vsel %vm2594_vm5, %v952_v20, %v956_v61  ;;  %v962_v59 = vrot.slane %v961_v49, 4  ;;  %v387_v60 = vshrl.u32 %v2775_v48, 16  ;;  %v1340_v0 = vunpack.c.l.b16 %v809_v24  ;;  %v2870_v61 = vld [vmem:[%s2557_s10 + $0x28] sm:$0xf]  ;;  %v2216_v49 = vld [vmem:[%s2557_s10 + $0x54] sm:$0xff] }
  0x6c   : > { %v812_v63 = vsel %vm2563_vm4, %v810_v52, %v811_v45  ;;  %v380_v38 = vor.u32 %v379_v57, %v376_v53  ;;  %v393_v1 = vshll.u32 %v2782_v56, 16  ;;  %v385_v9 = vrot.slane %v383_v55, 5  ;;  %v2222_v56 = vld [vmem:[%s2557_s10 + $0x48] sm:$0xff]  ;;  %v2893_v52 = vld [vmem:[%s2557_s10 + $0x64] sm:$0xf] }
  0x6d   : > { %v967_v7 = vsel %vm2594_vm5, %v962_v59, %v966_v50  ;;  %v1341_v8 = vunpack.c.l.b16 %v812_v63  ;;  %v389_v48 = vrot.slane %v387_v60, 4  ;;  %v2853_v13 = vunpack.c.l.b16 %v957_v58 }
  0x6e   : > { %v2855_v14 = vunpack.c.l.b16 %v967_v7  ;;  %v381_v15 = vrot.slane %v380_v38, 4  ;;  %v2073_v10 = vrot.slane %v2065_v62, 9  ;;  %v395_v18 = vrot.slane %v393_v1, 5  ;;  %v2905_v38 = vld [vmem:[%s2557_s10 + $0x68] sm:$0x1] }
  0x6f   : > { %v390_v17 = vor.u32 %v389_v48, %v385_v9  ;;  %v1081_v19 = vrot.slane %v2844_v4, 5  ;;  %v1084_v25 = vrot.slane %v2847_v43, 5  ;;  %v2860_v21 = vpack.c.b16 %v1341_v8, %v1340_v0  ;;  %v2010_v7 = vld [vmem:[%s2557_s10 + $0x54] sm:$0xf] }
  0x70   : > { %v386_v22 = vsel %vm2594_vm5, %v381_v15, %v385_v9  ;;  %v565_v37 = vshrl.u32 %v2000_v12, 16  ;;  %v568_v23 = vshll.u32 %v2000_v12, 16  ;;  %v574_v35 = vshll.u32 %v2793_v3, 16 }
  0x71   : > { %1274 = vrot.lane.b32.xlu0 %v2211_v6, %s2451_s11  ;;  %v391_v26 = vrot.slane %v390_v17, 4  ;;  %v2865_v54 = vunpack.c.l.b16 %v386_v22  ;;  %v1082_v30 = vsel %vm2563_vm4, %v2073_v10, %v1081_v19  ;;  %v1083_v33 = vrot.slane %v1081_v19, 4 }
  0x72   : > { %v1458_v27 = vunpack.c.l.b16 %v1082_v30  ;;  %v567_v31 = vrot.slane %v565_v37, 4  ;;  %v570_v34 = vrot.slane %v568_v23, 5  ;;  %v578_v32 = vshrl.u32 %v2793_v3, 16  ;;  %v2219_v30 = vld [vmem:[%s2557_s10 + $0x24] sm:$0xff] }
  0x73   : > { %1236 = vrot.lane.b32.xlu1 %v1222_v11, %s2453_s21  ;;  %1408 = vrot.lane.b32.xlu2 %v2222_v56, %s2452_s20  ;;  %v396_v40 = vsel %vm2594_vm5, %v391_v26, %v395_v18  ;;  %v1085_v41 = vsel %vm2563_vm4, %v1083_v33, %v1084_v25  ;;  %v584_v42 = vshll.u32 %v2796_v2, 16  ;;  %v576_v11 = vrot.slane %v574_v35, 5  ;;  %v212_v26 = vld [vmem:[%s2557_s10 + $0x3c] sm:$0xf] }
  0x74   : > { %v2885_v16 = vunpack.c.l.b16 %v396_v40  ;;  %v1459_v45 = vunpack.c.l.b16 %v1085_v41  ;;  %v571_v46 = vor.u32 %v570_v34, %v567_v31  ;;  %v1436_v20 = vpack.c.b16 %v2855_v14, %v2853_v13 }
  0x75   : > { %v580_v50 = vrot.slane %v578_v32, 4  ;;  %v1991_v24 = vrot.slane %v424_v39, 9  ;;  %v479_v3 = vrot.slane %v2870_v61, 5  ;;  %v586_v57 = vrot.slane %v584_v42, 5 }
  0x76   : > { %v1182_v2 = vpack.c.b16 %v2885_v16, %v2865_v54  ;;  %v572_v53 = vrot.slane %v571_v46, 4  ;;  %v482_v58 = vrot.slane %v2883_v44, 5  ;;  %v993_v62 = vshrl.u32 %v2052_v47, 16 }
  0x77   : > { %v581_v59 = vor.u32 %v580_v50, %v576_v11  ;;  %v480_v55 = vsel %vm2563_vm4, %v1991_v24, %v479_v3  ;;  %v481_v60 = vrot.slane %v479_v3, 4  ;;  %v2900_v63 = vpack.c.b16 %v1459_v45, %v1458_v27  ;;  %v2931_v45 = vld [vmem:[%s2557_s10 + $0x40] sm:$0xf] }
  0x78   : > { %v577_v0 = vsel %vm2594_vm5, %v572_v53, %v576_v11  ;;  %v996_v1 = vshll.u32 %v2052_v47, 16  ;;  %v1002_v6 = vshll.u32 %v2893_v52, 16  ;;  %v1206_v48 = vunpack.c.l.b16 %v480_v55  ;;  %v2042_v55 = vld [vmem:[%s2557_s10 + $0x24] sm:$0xf] }
  0x79   : > { %1284 = vrot.lane.b32.xlu0 %v2216_v49, %s2451_s11  ;;  %v582_v8 = vrot.slane %v581_v59, 4  ;;  %v483_v9 = vsel %vm2563_vm4, %v481_v60, %v482_v58  ;;  %v995_v12 = vrot.slane %v993_v62, 4  ;;  %v1006_v10 = vshrl.u32 %v2893_v52, 16  ;;  %v2936_v49 = vld [vmem:[%s2557_s10 + $0x44] sm:$0x1] }
  0x7a   : > { %v1207_v13 = vunpack.c.l.b16 %v483_v9  ;;  %v998_v14 = vrot.slane %v996_v1, 5  ;;  %v1004_v15 = vrot.slane %v1002_v6, 5  ;;  %v1012_v17 = vshll.u32 %v2905_v38, 16 }
  0x7b   : > { %1354 = vrot.lane.b32.xlu1 %v2831_v51, %s2458_s4  ;;  %1448 = vrot.lane.b32.xlu2 %v1436_v20, %s2457_s29  ;;  %v587_v56 = vsel %vm2594_vm5, %v582_v8, %v586_v57  ;;  %v685_v18 = vshrl.u32 %v2010_v7, 16  ;;  %v688_v19 = vshll.u32 %v2010_v7, 16  ;;  %v2919_v25 = vunpack.c.l.b16 %v577_v0 }
  0x7c   : > { %v2921_v22 = vunpack.c.l.b16 %v587_v56  ;;  %v999_v37 = vor.u32 %v998_v14, %v995_v12  ;;  %v1008_v23 = vrot.slane %v1006_v10, 4  ;;  %v2925_v33 = vpack.c.b16 %v1207_v13, %v1206_v48 }
  0x7d   : > { %v687_v51 = vrot.slane %v685_v18, 4  ;;  %v690_v27 = vrot.slane %v688_v19, 5  ;;  %v694_v31 = vshll.u32 %v2815_v28, 16  ;;  %v1014_v39 = vrot.slane %v1012_v17, 5  ;;  %v2004_v19 = vld [vmem:[%s2557_s10 + $0x30] sm:$0xf] }
  0x7e   : > { %v1000_v34 = vrot.slane %v999_v37, 4  ;;  %v1009_v35 = vor.u32 %v1008_v23, %v1004_v15  ;;  %v698_v40 = vshrl.u32 %v2815_v28, 16  ;;  %v704_v42 = vshll.u32 %v2818_v29, 16 }
  0x7f   : > { %v691_v41 = vor.u32 %v690_v27, %v687_v51  ;;  %v696_v32 = vrot.slane %v694_v31, 5  ;;  %v350_v46 = vshrl.u32 %v212_v26, 16  ;;  %v353_v50 = vshll.u32 %v212_v26, 16  ;;  %v2968_v26 = vld [vmem:[%s2557_s10 + $0x34] sm:$0xf] }
  0x80   : > { %v1005_v11 = vsel %vm2594_vm5, %v1000_v34, %v1004_v15  ;;  %v1010_v47 = vrot.slane %v1009_v35, 4  ;;  %v700_v20 = vrot.slane %v698_v40, 4  ;;  %v1305_v28 = vpack.c.b16 %v2921_v22, %v2919_v25  ;;  %v2975_v35 = vld [vmem:[%s2557_s10 + $0x38] sm:$0x1] }
  0x81   : > { %1402 = vrot.lane.b32.xlu0 %v2219_v30, %s2452_s20  ;;  %v692_v24 = vrot.slane %v691_v41, 4  ;;  %v706_v3 = vrot.slane %v704_v42, 5  ;;  %v352_v29 = vrot.slane %v350_v46, 4  ;;  %v355_v58 = vrot.slane %v353_v50, 5  ;;  %v208_v46 = vld [vmem:[%s2557_s10 + $0x24] sm:$0xf] }
  0x82   : > { %v1015_v53 = vsel %vm2594_vm5, %v1010_v47, %v1014_v39  ;;  %v701_v57 = vor.u32 %v700_v20, %v696_v32  ;;  %v359_v59 = vshll.u32 %v2931_v45, 16  ;;  %v2951_v60 = vunpack.c.l.b16 %v1005_v11 }
  0x83   : > { %1364 = vrot.lane.b32.xlu1 %v2860_v21, %s2458_s4  ;;  %1196 = vrot.lane.b32.xlu2 %v1182_v2, %s2455_s27  ;;  %v697_v62 = vsel %vm2594_vm5, %v692_v24, %v696_v32  ;;  %v363_v0 = vshrl.u32 %v2931_v45, 16  ;;  %v369_v1 = vshll.u32 %v2936_v49, 16  ;;  %v1429_v6 = vunpack.c.l.b16 %v1015_v53  ;;  %v2224_v21 = vld [vmem:[%s2557_s10 + $0x60] sm:$0xff] }
  0x84   : > { %v702_v7 = vrot.slane %v701_v57, 4  ;;  %v356_v8 = vor.u32 %v355_v58, %v352_v29  ;;  %v361_v9 = vrot.slane %v359_v59, 5  ;;  %v2958_v48 = vunpack.c.l.b16 %v697_v62 }
  0x85   : > { %v365_v12 = vrot.slane %v363_v0, 4  ;;  %v371_v54 = vrot.slane %v369_v1, 5  ;;  %v873_v16 = vshrl.u32 %v2042_v55, 16  ;;  %v876_v14 = vshll.u32 %v2042_v55, 16 }
  0x86   : > { %v707_v2 = vsel %vm2594_vm5, %v702_v7, %v706_v3  ;;  %v357_v13 = vrot.slane %v356_v8, 4  ;;  %v882_v15 = vshll.u32 %v2844_v4, 16  ;;  %v886_v18 = vshrl.u32 %v2844_v4, 16 }
  0x87   : > { %v1301_v10 = vunpack.c.l.b16 %v707_v2  ;;  %v366_v56 = vor.u32 %v365_v12, %v361_v9  ;;  %v875_v17 = vrot.slane %v873_v16, 4  ;;  %v1438_v25 = vpack.c.b16 %v1429_v6, %v2951_v60  ;;  %v1654_v16 = vld [vmem:[%s3409_s1 + $0x10] sm:$0xf] }
  0x88   : > { %v878_v22 = vrot.slane %v876_v14, 5  ;;  %v884_v37 = vrot.slane %v882_v15, 5  ;;  %v892_v23 = vshll.u32 %v2847_v43, 16  ;;  %v362_v51 = vsel %vm2594_vm5, %v357_v13, %v361_v9 }
  0x89   : > { %1412 = vrot.lane.b32.xlu0 %v2224_v21, %s2452_s20  ;;  %v1310_v30 = vpack.c.b16 %v1301_v10, %v2958_v48  ;;  %v367_v27 = vrot.slane %v366_v56, 4  ;;  %v888_v31 = vrot.slane %v886_v18, 4  ;;  %v613_v39 = vshrl.u32 %v2004_v19, 16  ;;  %v2008_v10 = vld [vmem:[%s2557_s10 + $0x48] sm:$0xf] }
  0x8a   : > { %v879_v4 = vor.u32 %v878_v22, %v875_v17  ;;  %v894_v34 = vrot.slane %v892_v23, 5  ;;  %v616_v40 = vshll.u32 %v2004_v19, 16  ;;  %v622_v32 = vshll.u32 %v2968_v26, 16 }
  0x8b   : > { %1482 = vrot.lane.b32.xlu1 %v2900_v63, %s2454_s24  ;;  %1314 = vrot.lane.b32.xlu2 %v1305_v28, %s2456_s28  ;;  %v372_v43 = vsel %vm2594_vm5, %v367_v27, %v371_v54  ;;  %v889_v41 = vor.u32 %v888_v31, %v884_v37  ;;  %v626_v42 = vshrl.u32 %v2968_v26, 16  ;;  %v1170_v11 = vunpack.c.l.b16 %v362_v51 }
  0x8c   : > { %v880_v47 = vrot.slane %v879_v4, 4  ;;  %v615_v20 = vrot.slane %v613_v39, 4  ;;  %v618_v50 = vrot.slane %v616_v40, 5  ;;  %v624_v3 = vrot.slane %v622_v32, 5  ;;  %v3024_v32 = vpop.permute.xlu2 %1400 }
  0x8d   : > { %v890_v24 = vrot.slane %v889_v41, 4  ;;  %v628_v29 = vrot.slane %v626_v42, 4  ;;  %v632_v63 = vshll.u32 %v2975_v35, 16  ;;  %v1171_v53 = vunpack.c.l.b16 %v372_v43  ;;  %v2070_v41 = vld [vmem:[%s2557_s10 + $0x60] sm:$0xe] }
  0x8e   : > { %v885_v28 = vsel %vm2594_vm5, %v880_v47, %v884_v37  ;;  %v619_v57 = vor.u32 %v618_v50, %v615_v20  ;;  %v302_v58 = vshrl.u32 %v208_v46, 16  ;;  %v305_v7 = vshll.u32 %v208_v46, 16 }
  0x8f   : > { %v895_v59 = vsel %vm2594_vm5, %v890_v24, %v894_v34  ;;  %v1418_v55 = vunpack.c.l.b16 %v885_v28  ;;  %v629_v60 = vor.u32 %v628_v29, %v624_v3  ;;  %v634_v62 = vrot.slane %v632_v63, 5  ;;  %v2227_v24 = vld [vmem:[%s3409_s1 + $0x8] sm:$0xff] }
  0x90   : > { %v1419_v0 = vunpack.c.l.b16 %v895_v59  ;;  %v620_v1 = vrot.slane %v619_v57, 4  ;;  %v304_v6 = vrot.slane %v302_v58, 4  ;;  %v311_v9 = vshll.u32 %v2870_v61, 16 }
  0x91   : > { %1452 = vrot.lane.b32.xlu0 %v1438_v25, %s2457_s29  ;;  %v630_v8 = vrot.slane %v629_v60, 4  ;;  %v315_v21 = vshrl.u32 %v2870_v61, 16  ;;  %v321_v48 = vshll.u32 %v2883_v44, 16  ;;  %v2994_v12 = vpop.permute.xlu1 %1272  ;;  %v307_v54 = vrot.slane %v305_v7, 5  ;;  %v3011_v25 = vld [vmem:[%s2557_s10 + $0x50] sm:$0x1] }
  0x92   : > { %v625_v2 = vsel %vm2594_vm5, %v620_v1, %v624_v3  ;;  %v313_v44 = vrot.slane %v311_v9, 5  ;;  %v1181_v14 = vpack.c.b16 %v1171_v53, %v1170_v11  ;;  %v1433_v56 = vpack.c.b16 %v1419_v0, %v1418_v55  ;;  %v2226_v9 = vld [vmem:[%s3409_s1] sm:$0xff] }
  0x93   : > { %1230 = vrot.lane.b32.xlu1 %v2925_v33, %s2453_s21  ;;  %1324 = vrot.lane.b32.xlu2 %v1310_v30, %s2456_s28  ;;  %v635_v61 = vsel %vm2594_vm5, %v630_v8, %v634_v62  ;;  %v317_v13 = vrot.slane %v315_v21, 4  ;;  %v308_v15 = vor.u32 %v307_v54, %v304_v6  ;;  %v323_v18 = vrot.slane %v321_v48, 5  ;;  %v3008_v33 = vld [vmem:[%s2557_s10 + $0x4c] sm:$0xf]  ;;  %v2213_v30 = vld [vmem:[%s2557_s10 + $0x30] sm:$0xff] }
  0x94   : > { %v1664_v19 = vunpack.c.l.b16 %v1654_v16  ;;  %v3013_v22 = vunpack.c.l.b16 %v625_v2  ;;  %v3015_v37 = vunpack.c.l.b16 %v635_v61  ;;  %v661_v31 = vshrl.u32 %v2008_v10, 16  ;;  %v2046_v62 = vld [vmem:[%s2557_s10 + $0x3c] sm:$0xf]  ;;  %v2215_v21 = vld [vmem:[%s2557_s10 + $0x48] sm:$0xff]  ;;  %v3059_v16 = vld [vmem:[%s2557_s10 + $0x44] sm:$0x1] }
  0x95   : > { %v318_v17 = vor.u32 %v317_v13, %v313_v44  ;;  %v309_v23 = vrot.slane %v308_v15, 4  ;;  %v664_v4 = vshll.u32 %v2008_v10, 16  ;;  %v670_v39 = vshll.u32 %v3008_v33, 16 }
  0x96   : > { %v1667_v27 = vpack.c.b16 %v1664_v19, %v1664_v19  ;;  %v674_v40 = vshrl.u32 %v3008_v33, 16  ;;  %v680_v43 = vshll.u32 %v3011_v25, 16  ;;  %v663_v47 = vrot.slane %v661_v31, 4 }
  0x97   : > { %v319_v51 = vrot.slane %v318_v17, 4  ;;  %v314_v34 = vsel %vm2594_vm5, %v309_v23, %v313_v44  ;;  %v666_v3 = vrot.slane %v664_v4, 5  ;;  %v672_v29 = vrot.slane %v670_v39, 5  ;;  %v2202_v44 = vld [vmem:[%s2557_s10] sm:$0xff] }
  0x98   : > { %v3029_v46 = vunpack.c.l.b16 %v314_v34  ;;  %v1689_v11 = vsel %vm1687_vm6, %v1667_v27, 0  ;;  %v676_v63 = vrot.slane %v674_v40, 4  ;;  %v2078_v53 = vrot.slane %v2070_v41, 9  ;;  %v2050_v40 = vld [vmem:[%s2557_s10 + $0x54] sm:$0xf] }
  0x99   : > { %1194 = vrot.lane.b32.xlu0 %v1181_v14, %s2455_s27  ;;  %v324_v42 = vsel %vm2594_vm5, %v319_v51, %v323_v18  ;;  %1696 = vmatpush.bf16.msra.mxu0 %v1689_v11  ;;  %v1116_v28 = vrot.slane %v2893_v52, 5  ;;  %v1119_v57 = vrot.slane %v2905_v38, 5  ;;  %v667_v59 = vor.u32 %v666_v3, %v663_v47  ;;  %v3049_v38 = vld [vmem:[%s2557_s10 + $0x40] sm:$0xf] }
  0x9a   : > { %v3032_v20 = vpop.permute.xlu0 %1224  ;;  %v1167_v50 = vunpack.c.l.b16 %v324_v42  ;;  %2228 = vmatpush.bf16.msra.mxu1 %v1689_v11  ;;  %v677_v55 = vor.u32 %v676_v63, %v672_v29  ;;  %v682_v60 = vrot.slane %v680_v43, 5  ;;  %2229 = vmatpush.bf16.msra.mxu2 %v1689_v11  ;;  %v1307_v0 = vpack.c.b16 %v3015_v37, %v3013_v22 }
  0x9b   : > { %1278 = vrot.lane.b32.xlu1 %v2213_v30, %s2451_s11  ;;  %1442 = vrot.lane.b32.xlu2 %v1433_v56, %s2457_s29  ;;  %v1117_v52 = vsel %vm2563_vm4, %v2078_v53, %v1116_v28  ;;  %v1118_v1 = vrot.slane %v1116_v28, 4  ;;  %v668_v7 = vrot.slane %v667_v59, 4  ;;  %v921_v2 = vshrl.u32 %v2046_v62, 16  ;;  %v426_v56 = vld [vmem:[%s2557_s10 + $0x3c] sm:$0xe] }
  0x9c   : > { %v3041_v58 = vpop.permute.xlu1 %1480  ;;  %2230 = vmatpush.bf16.msra.mxu3 %v1689_v11  ;;  %v1179_v6 = vpack.c.b16 %v1167_v50, %v3029_v46  ;;  %v678_v8 = vrot.slane %v677_v55, 4  ;;  %v1468_v54 = vunpack.c.l.b16 %v1117_v52  ;;  %v924_v61 = vshll.u32 %v2046_v62, 16  ;;  %v3084_v53 = vld [vmem:[%s2557_s10 + $0x58] sm:$0xf]  ;;  %v2221_v28 = vld [vmem:[%s2557_s10 + $0x3c] sm:$0xff] }
  0x9d   : > { %1697 = vmatpush.bf16.msra.mxu0 %v2227_v24  ;;  %v1120_v48 = vsel %vm2563_vm4, %v1118_v1, %v1119_v57  ;;  %v673_v13 = vsel %vm2594_vm5, %v668_v7, %v672_v29  ;;  %v930_v10 = vshll.u32 %v3049_v38, 16  ;;  %v923_v19 = vrot.slane %v921_v2, 4  ;;  %v3093_v55 = vld [vmem:[%s2557_s10 + $0x5c] sm:$0x1]  ;;  %v2025_v1 = vld [vmem:[%s2557_s10 + $0x30] sm:$0xe] }
  0x9e   : > { %2231 = vmatpush.bf16.msra.mxu1 %v2227_v24  ;;  %v683_v14 = vsel %vm2594_vm5, %v678_v8, %v682_v60  ;;  %v1469_v15 = vunpack.c.l.b16 %v1120_v48  ;;  %2232 = vmatpush.bf16.msra.mxu2 %v2227_v24  ;;  %v1298_v17 = vunpack.c.l.b16 %v673_v13  ;;  %v926_v22 = vrot.slane %v924_v61, 5  ;;  %v1353_v51 = vpop.permute.xlu2 %1352 }
  0x9f   : > { %v1299_v18 = vunpack.c.l.b16 %v683_v14  ;;  %v932_v37 = vrot.slane %v930_v10, 5  ;;  %v934_v23 = vshrl.u32 %v3049_v38, 16  ;;  %v940_v30 = vshll.u32 %v3059_v16, 16 }
  0xa0   : > { %2233 = vmatpush.bf16.msra.mxu3 %v2227_v24  ;;  %v1478_v31 = vpack.c.b16 %v1469_v15, %v1468_v54  ;;  %v927_v4 = vor.u32 %v926_v22, %v923_v19  ;;  %v1993_v34 = vrot.slane %v426_v56, 9  ;;  %v493_v39 = vrot.slane %v2931_v45, 5 }
  0xa1   : > { %1318 = vrot.lane.b32.xlu0 %v1307_v0, %s2456_s28  ;;  %1698 = vmatpush.bf16.msra.mxu0 %v2226_v9  ;;  %v1309_v41 = vpack.c.b16 %v1299_v18, %v1298_v17  ;;  %v936_v42 = vrot.slane %v934_v23, 4  ;;  %v496_v46 = vrot.slane %v2936_v49, 5  ;;  %v942_v63 = vrot.slane %v940_v30, 5  ;;  %v2069_v17 = vld [vmem:[%s2557_s10 + $0x54] sm:$0xe] }
  0xa2   : > { %2234 = vmatpush.bf16.msra.mxu1 %v2226_v9  ;;  %2235 = vmatpush.bf16.msra.mxu2 %v2226_v9  ;;  %v928_v47 = vrot.slane %v927_v4, 4  ;;  %v494_v50 = vsel %vm2563_vm4, %v1993_v34, %v493_v39  ;;  %v495_v45 = vrot.slane %v493_v39, 4  ;;  %v969_v49 = vshrl.u32 %v2050_v40, 16  ;;  %v3119_v4 = vld [vmem:[%s2557_s10 + $0x58] sm:$0xf] }
  0xa3   : > { %1282 = vrot.lane.b32.xlu1 %v2215_v21, %s2451_s11  ;;  %1190 = vrot.lane.b32.xlu2 %v1179_v6, %s2455_s27  ;;  %v1185_v27 = vpop.permute.xlu0 %1184  ;;  %v937_v29 = vor.u32 %v936_v42, %v932_v37  ;;  %v972_v60 = vshll.u32 %v2050_v40, 16  ;;  %v1210_v52 = vunpack.c.l.b16 %v494_v50  ;;  %v982_v54 = vshrl.u32 %v3084_v53, 16 }
  0xa4   : > { %v1499_v43 = vsel %vm1496_vm7, %v2202_v44, %v1185_v27  ;;  %2236 = vmatpush.bf16.msra.mxu3 %v2226_v9  ;;  %v497_v59 = vsel %vm2563_vm4, %v495_v45, %v496_v46  ;;  %v971_v7 = vrot.slane %v969_v49, 4  ;;  %v978_v9 = vshll.u32 %v3084_v53, 16  ;;  %v3134_v45 = vld [vmem:[%s2557_s10 + $0x5c] sm:$0x1]  ;;  %v2027_v49 = vld [vmem:[%s2557_s10 + $0x48] sm:$0xe] }
  0xa5   : > { %v1523_v11 = vsel %vm1521_vm8, %v1499_v43, %v3032_v20  ;;  %v933_v20 = vsel %vm2594_vm5, %v928_v47, %v932_v37  ;;  %v1211_v6 = vunpack.c.l.b16 %v497_v59  ;;  %v974_v8 = vrot.slane %v972_v60, 5 }
  0xa6   : > { %v1313_v24 = vpop.permute.xlu1 %1312  ;;  %v1540_v3 = vsel %vm1538_vm9, %v1523_v11, %v2994_v12  ;;  %v938_v12 = vrot.slane %v937_v29, 4  ;;  %v1422_v0 = vunpack.c.l.b16 %v933_v20  ;;  %v988_v2 = vshll.u32 %v3093_v55, 16 }
  0xa7   : > { %v1557_v57 = vsel %vm1555_vm10, %v1540_v3, %v1313_v24  ;;  %v975_v13 = vor.u32 %v974_v8, %v971_v7  ;;  %v980_v14 = vrot.slane %v978_v9, 5  ;;  %v2033_v15 = vrot.slane %v2025_v1, 9  ;;  %v3154_v8 = vld [vmem:[%s2557_s10 + $0x68] sm:$0x1]  ;;  %v2067_v9 = vld [vmem:[%s2557_s10 + $0x3c] sm:$0xe] }
  0xa8   : > { %v1574_v62 = vsel %vm1572_vm11, %v1557_v57, %v1353_v51  ;;  %v943_v48 = vsel %vm2594_vm5, %v938_v12, %v942_v63  ;;  %v984_v10 = vrot.slane %v982_v54, 4  ;;  %v787_v56 = vrot.slane %v2968_v26, 5  ;;  %v2223_v26 = vld [vmem:[%s2557_s10 + $0x54] sm:$0xff]  ;;  %v3148_v12 = vld [vmem:[%s2557_s10 + $0x64] sm:$0xf] }
  0xa9   : > { %1322 = vrot.lane.b32.xlu0 %v1309_v41, %s2456_s28  ;;  %v1591_v21 = vsel %vm1589_vm12, %v1574_v62, %v3024_v32  ;;  %v1423_v44 = vunpack.c.l.b16 %v943_v48  ;;  %v976_v37 = vrot.slane %v975_v13, 4  ;;  %v790_v23 = vrot.slane %v2975_v35, 5  ;;  %v428_v35 = vld [vmem:[%s2557_s10 + $0x54] sm:$0xe] }
  0xaa   : > { %v985_v51 = vor.u32 %v984_v10, %v980_v14  ;;  %v990_v27 = vrot.slane %v988_v2, 5  ;;  %v1221_v34 = vpack.c.b16 %v1211_v6, %v1210_v52  ;;  %v789_v39 = vrot.slane %v787_v56, 4 }
  0xab   : > { %1406 = vrot.lane.b32.xlu1 %v2221_v28, %s2452_s20  ;;  %1492 = vrot.lane.b32.xlu2 %v1478_v31, %s2454_s24  ;;  %v1441_v61 = vpop.permute.xlu0 %1440  ;;  %v1435_v22 = vpack.c.b16 %v1423_v44, %v1422_v0  ;;  %v788_v31 = vsel %vm2563_vm4, %v2033_v15, %v787_v56  ;;  %v2077_v40 = vrot.slane %v2069_v17, 9  ;;  %v1109_v42 = vrot.slane %v3084_v53, 5  ;;  %v2029_v0 = vld [vmem:[%s2557_s10 + $0x60] sm:$0xe] }
  0xac   : > { %v1608_v32 = vsel %vm1606_vm13, %v1591_v21, %v1441_v61  ;;  %v986_v41 = vrot.slane %v985_v51, 4  ;;  %v1112_v46 = vrot.slane %v3093_v55, 5  ;;  %v791_v47 = vsel %vm2563_vm4, %v789_v39, %v790_v23  ;;  %v2204_v21 = vld [vmem:[%s2557_s10 + $0x18] sm:$0xff] }
  0xad   : > { %v3110_v18 = vpop.permute.xlu2 %1188  ;;  %v1625_v19 = vsel %vm1623_vm14, %v1608_v32, %v3041_v58  ;;  %v981_v58 = vsel %vm2594_vm5, %v976_v37, %v980_v14  ;;  %v1334_v50 = vunpack.c.l.b16 %v788_v31  ;;  %v507_v24 = vrot.slane %v3119_v4, 5 }
  0xae   : > { %v1642_v30 = vsel %vm1640_vm15, %v1625_v19, 0  ;;  %v1426_v11 = vunpack.c.l.b16 %v981_v58  ;;  %v991_v3 = vsel %vm2594_vm5, %v986_v41, %v990_v27  ;;  %v1110_v29 = vsel %vm2563_vm4, %v2077_v40, %v1109_v42  ;;  %v2071_v58 = vld [vmem:[%s2557_s10 + $0x6c] sm:$0xe]  ;;  %v216_v41 = vld [vmem:[%s2557_s10 + $0x54] sm:$0xf] }
  0xaf   : > { %2184 = vmatmul.msk.bf16.vlgmr.msra.gmra.mxu0 %vm1670_vm0, %v1642_v30  ;;  %v1111_v63 = vrot.slane %v1109_v42, 4  ;;  %v1995_v53 = vrot.slane %v428_v35, 9  ;;  %v1427_v57 = vunpack.c.l.b16 %v991_v3  ;;  %v1335_v20 = vunpack.c.l.b16 %v791_v47 }
  0xb0   : > { %v3126_v43 = vpop.permute.xlu1 %1192  ;;  %v1466_v59 = vunpack.c.l.b16 %v1110_v29  ;;  %v509_v55 = vrot.slane %v507_v24, 4  ;;  %v510_v62 = vrot.slane %v3134_v45, 5  ;;  %v2035_v7 = vrot.slane %v2027_v49, 9  ;;  %v2217_v29 = vld [vmem:[%s2557_s10 + $0x60] sm:$0xff] }
  0xb1   : > { %1446 = vrot.lane.b32.xlu0 %v1435_v22, %s2457_s29  ;;  %v1113_v60 = vsel %vm2563_vm4, %v1111_v63, %v1112_v46  ;;  %v1437_v1 = vpack.c.b16 %v1427_v57, %v1426_v11  ;;  %v508_v48 = vsel %vm2563_vm4, %v1995_v53, %v507_v24  ;;  %v801_v2 = vrot.slane %v3008_v33, 5  ;;  %v2012_v57 = vld [vmem:[%s2557_s10 + $0x60] sm:$0xf] }
  0xb2   : > { %v1467_v6 = vunpack.c.l.b16 %v1113_v60  ;;  %v511_v54 = vsel %vm2563_vm4, %v509_v55, %v510_v62  ;;  %v804_v61 = vrot.slane %v3011_v25, 5  ;;  %v1347_v44 = vpack.c.b16 %v1335_v20, %v1334_v50  ;;  %v3172_v25 = vld [vmem:[%s2557_s10 + $0x70] sm:$0xf]  ;;  %v3199_v50 = vld [vmem:[%s2557_s10 + $0x74] sm:$0x1] }
  0xb3   : > { %1410 = vrot.lane.b32.xlu1 %v2223_v26, %s2452_s20  ;;  %1234 = vrot.lane.b32.xlu2 %v1221_v34, %s2453_s21  ;;  %v1229_v28 = vpop.permute.xlu0 %1228  ;;  %v2037_v14 = vrot.slane %v2029_v0, 9  ;;  %v815_v15 = vrot.slane %v3148_v12, 5  ;;  %v802_v32 = vsel %vm2563_vm4, %v2035_v7, %v801_v2  ;;  %v803_v10 = vrot.slane %v801_v2, 4 }
  0xb4   : > { %v1477_v13 = vpack.c.b16 %v1467_v6, %v1466_v59  ;;  %v818_v56 = vrot.slane %v3154_v8, 5  ;;  %v2075_v17 = vrot.slane %v2067_v9, 9  ;;  %v1214_v33 = vunpack.c.l.b16 %v508_v48 }
  0xb5   : > { %v3151_v52 = vpop.permute.xlu2 %1276  ;;  %v1215_v22 = vunpack.c.l.b16 %v511_v54  ;;  %v1505_v37 = vsel %vm1496_vm7, %v2204_v21, %v3110_v18  ;;  %v805_v23 = vsel %vm2563_vm4, %v803_v10, %v804_v61  ;;  %v817_v30 = vrot.slane %v815_v15, 4 }
  0xb6   : > { %v1095_v51 = vrot.slane %v3049_v38, 5  ;;  %v1338_v31 = vunpack.c.l.b16 %v802_v32  ;;  %v1339_v26 = vunpack.c.l.b16 %v805_v23  ;;  %v816_v34 = vsel %vm2563_vm4, %v2037_v14, %v815_v15  ;;  %v2054_v15 = vld [vmem:[%s2557_s10 + $0x6c] sm:$0xf] }
  0xb7   : > { %v1098_v18 = vrot.slane %v3059_v16, 5  ;;  %v819_v39 = vsel %vm2563_vm4, %v817_v30, %v818_v56  ;;  %v1123_v35 = vrot.slane %v3172_v25, 5  ;;  %v1223_v46 = vpack.c.b16 %v1215_v22, %v1214_v33  ;;  %v2206_v33 = vld [vmem:[%s2557_s10 + $0x30] sm:$0xff] }
  0xb8   : > { %v3168_v19 = vpop.permute.xlu1 %1316  ;;  %v1096_v38 = vsel %vm2563_vm4, %v2075_v17, %v1095_v51  ;;  %v1097_v40 = vrot.slane %v1095_v51, 4  ;;  %v1527_v11 = vsel %vm1521_vm8, %v1505_v37, %v1229_v28  ;;  %v1342_v47 = vunpack.c.l.b16 %v816_v34  ;;  %v2225_v51 = vld [vmem:[%s2557_s10 + $0x6c] sm:$0xff] }
  0xb9   : > { %1450 = vrot.lane.b32.xlu0 %v1437_v1, %s2457_s29  ;;  %v2079_v24 = vrot.slane %v2071_v58, 9  ;;  %v1349_v3 = vpack.c.b16 %v1339_v26, %v1338_v31  ;;  %v1343_v63 = vunpack.c.l.b16 %v819_v39  ;;  %v1462_v53 = vunpack.c.l.b16 %v1096_v38 }
  0xba   : > { %v1099_v16 = vsel %vm2563_vm4, %v1097_v40, %v1098_v18  ;;  %v398_v49 = vshrl.u32 %v216_v41, 16  ;;  %v1125_v20 = vrot.slane %v1123_v35, 4  ;;  %v401_v59 = vshll.u32 %v216_v41, 16 }
  0xbb   : > { %1358 = vrot.lane.b32.xlu2 %v1347_v44, %s2458_s4  ;;  %1490 = vrot.lane.b32.xlu1 %v1477_v13, %s2454_s24  ;;  %v3181_v27 = vpop.permute.xlu0 %1232  ;;  %v407_v55 = vshll.u32 %v3119_v4, 16  ;;  %v411_v60 = vshrl.u32 %v3119_v4, 16  ;;  %v1463_v28 = vunpack.c.l.b16 %v1099_v16  ;;  %v1126_v62 = vrot.slane %v3199_v50, 5 }
  0xbc   : > { %v400_v0 = vrot.slane %v398_v49, 4  ;;  %v417_v1 = vshll.u32 %v3134_v45, 16  ;;  %v403_v6 = vrot.slane %v401_v59, 5  ;;  %v709_v21 = vshrl.u32 %v2012_v57, 16 }
  0xbd   : > { %v3193_v42 = vpop.permute.xlu2 %1280  ;;  %v409_v7 = vrot.slane %v407_v55, 5  ;;  %v413_v9 = vrot.slane %v411_v60, 4  ;;  %v1544_v48 = vsel %vm1538_vm9, %v1527_v11, %v3151_v52  ;;  %v1124_v2 = vsel %vm2563_vm4, %v2079_v24, %v1123_v35 }
  0xbe   : > { %v712_v45 = vshll.u32 %v2012_v57, 16  ;;  %v404_v61 = vor.u32 %v403_v6, %v400_v0  ;;  %v419_v13 = vrot.slane %v417_v1, 5  ;;  %v711_v14 = vrot.slane %v709_v21, 4 }
  0xbf   : > { %v414_v44 = vor.u32 %v413_v9, %v409_v7  ;;  %v1351_v52 = vpack.c.b16 %v1343_v63, %v1342_v47  ;;  %v718_v56 = vshll.u32 %v3148_v12, 16  ;;  %v722_v17 = vshrl.u32 %v3148_v12, 16 }
  0xc0   : > { %v714_v10 = vrot.slane %v712_v45, 5  ;;  %v1475_v22 = vpack.c.b16 %v1463_v28, %v1462_v53  ;;  %v1127_v37 = vsel %vm2563_vm4, %v1125_v20, %v1126_v62  ;;  %v405_v23 = vrot.slane %v404_v61, 4 }
  0xc1   : > { %1238 = vrot.lane.b32.xlu0 %v1223_v46, %s2453_s21  ;;  %v415_v30 = vrot.slane %v414_v44, 4  ;;  %v720_v31 = vrot.slane %v718_v56, 5  ;;  %v724_v26 = vrot.slane %v722_v17, 4  ;;  %v728_v34 = vshll.u32 %v3154_v8, 16 }
  0xc2   : > { %v3210_v54 = vpop.permute.xlu1 %1320  ;;  %v1017_v18 = vshrl.u32 %v2054_v15, 16  ;;  %v410_v58 = vsel %vm2594_vm5, %v405_v23, %v409_v7  ;;  %v715_v12 = vor.u32 %v714_v10, %v711_v14  ;;  %v1020_v38 = vshll.u32 %v2054_v15, 16 }
  0xc3   : > { %1362 = vrot.lane.b32.xlu2 %v1349_v3, %s2458_s4  ;;  %1286 = vrot.lane.b32.xlu1 %v2217_v29, %s2451_s11  ;;  %v1357_v4 = vpop.permute.xlu0 %1356  ;;  %v420_v39 = vsel %vm2594_vm5, %v415_v30, %v419_v13  ;;  %v1561_v5 = vsel %vm1555_vm10, %v1544_v48, %v3168_v19  ;;  %v1470_v40 = vunpack.c.l.b16 %v1124_v2  ;;  %v1471_v35 = vunpack.c.l.b16 %v1127_v37  ;;  %s3303_s11 = sand.u32 1, %s2425_s13  }
  0xc4   : > { %v725_v41 = vor.u32 %v724_v26, %v720_v31  ;;  %v1511_v8 = vsel %vm1496_vm7, %v2206_v33, %v3126_v43  ;;  %v1578_v46 = vsel %vm1572_vm11, %v1561_v5, %v1357_v4  ;;  %v1026_v11 = vshll.u32 %v3172_v25, 16 }
  0xc5   : > { %v1405_v32 = vpop.permute.xlu2 %1404  ;;  %v1030_v47 = vshrl.u32 %v3172_v25, 16  ;;  %v1174_v19 = vunpack.c.l.b16 %v410_v58  ;;  %v1175_v24 = vunpack.c.l.b16 %v420_v39  ;;  %v730_v3 = vrot.slane %v728_v34, 5 }
  0xc6   : > { %v1019_v29 = vrot.slane %v1017_v18, 4  ;;  %v716_v63 = vrot.slane %v715_v12, 4  ;;  %v726_v53 = vrot.slane %v725_v41, 4  ;;  %v1022_v49 = vrot.slane %v1020_v38, 5  ;;  %v2203_v18 = vld [vmem:[%s2557_s10 + $0xc] sm:$0xff] }
  0xc7   : > { %v1028_v57 = vrot.slane %v1026_v11, 5  ;;  %v1479_v59 = vpack.c.b16 %v1471_v35, %v1470_v40  ;;  %v1032_v55 = vrot.slane %v1030_v47, 4  ;;  %v1531_v25 = vsel %vm1521_vm8, %v1511_v8, %v3181_v27  ;;  %v2208_v41 = vld [vmem:[%s2557_s10 + $0x48] sm:$0xff] }
  0xc8   : > { %v1595_v60 = vsel %vm1589_vm12, %v1578_v46, %v1405_v32  ;;  %v1183_v28 = vpack.c.b16 %v1175_v24, %v1174_v19  ;;  %v1036_v62 = vshll.u32 %v3199_v50, 16  ;;  %v721_v0 = vsel %vm2594_vm5, %v716_v63, %v720_v31 }
  0xc9   : > { %1366 = vrot.lane.b32.xlu0 %v1351_v52, %s2458_s4  ;;  %v731_v1 = vsel %vm2594_vm5, %v726_v53, %v730_v3  ;;  %v1023_v6 = vor.u32 %v1022_v49, %v1019_v29  ;;  %v1033_v7 = vor.u32 %v1032_v55, %v1028_v57  ;;  %v1548_v9 = vsel %vm1538_vm9, %v1531_v25, %v3193_v42  ;;  %s2343_s4 = scalar_lea.hbm %s3410_s2, 512 }
  0xca   : > { %v1302_v48 = vunpack.c.l.b16 %v721_v0  ;;  %v1303_v50 = vunpack.c.l.b16 %v731_v1  ;;  %v1038_v61 = vrot.slane %v1036_v62, 5  ;;  %v1565_v15 = vsel %vm1555_vm10, %v1548_v9, %v3210_v54 }
  0xcb   : > { %1486 = vrot.lane.b32.xlu2 %v1475_v22, %s2454_s24  ;;  %1414 = vrot.lane.b32.xlu1 %v2225_v51, %s2452_s20  ;;  %v1361_v16 = vpop.permute.xlu0 %1360  ;;  %v1024_v2 = vrot.slane %v1023_v6, 4  ;;  %v1034_v45 = vrot.slane %v1033_v7, 4  ;;  %s1982_s20 = sshll.u32 %s3303_s11, 7 }
  0xcc   : > { %v1582_v42 = vsel %vm1572_vm11, %v1565_v15, %v1361_v16  ;;  %v1311_v32 = vpack.c.b16 %v1303_v50, %v1302_v48 }
  0xcd   : > { %v1445_v43 = vpop.permute.xlu1 %1444  ;;  %v1409_v20 = vpop.permute.xlu2 %1408  ;;  %v1029_v52 = vsel %vm2594_vm5, %v1024_v2, %v1028_v57  ;;  %v1039_v10 = vsel %vm2594_vm5, %v1034_v45, %v1038_v61  ;;  %v2207_v45 = vld [vmem:[%s2557_s10 + $0x3c] sm:$0xff] }
  0xce   : > { %v1612_v27 = vsel %vm1606_vm13, %v1595_v60, %v1445_v43  ;;  %v1599_v56 = vsel %vm1589_vm12, %v1582_v42, %v1409_v20  ;;  %v1430_v33 = vunpack.c.l.b16 %v1029_v52  ;;  %v1431_v22 = vunpack.c.l.b16 %v1039_v10 }
  0xd0   : > { %v1439_v31 = vpack.c.b16 %v1431_v22, %v1430_v33 }
  0xd1   : > { %1494 = vrot.lane.b32.xlu0 %v1479_v59, %s2454_s24  ;;  %s3313_s24 = scalar_lea.vmem [#allocation2], %s1982_s20  ;;  %s1818_s20 = scalar_lea.sflag [#allocation3], %s3303_s11 }
  0xd2   : > { %s1837_s8 = sshll.u32 %s3313_s24, 4  ;;  %s1838_s8 = int_to_ptr.vmem [resolvable:$true] %s1837_s8 }
  0xd3   : > { %1198 = vrot.lane.b32.xlu2 %v1183_v28, %s2455_s27  ;;  %v1485_v21 = vpop.permute.xlu0 %1484  ;;  %s2195_s27 = sshll.u32 %s2437_s16, 5 }
  0xd4   : > { %v1629_v4 = vsel %vm1623_vm14, %v1612_v27, %v1485_v21  ;;  %v2205_v27 = vld [vmem:[%s2557_s10 + $0x24] sm:$0xff] }
  0xd5   : > { %v1187_v44 = vpop.permute.xlu1 %1186  ;;  %v1449_v13 = vpop.permute.xlu2 %1448  ;;  %v1644_v14 = vsel %vm1640_vm15, %v1629_v4, 0 }
  0xd6   : > { %2186 = vmatmul.msk.bf16.vlgmr.msra.gmra.mxu1 %vm1670_vm0, %v1644_v14  ;;  %v1616_v54 = vsel %vm1606_vm13, %v1599_v56, %v1449_v13  ;;  %v1502_v39 = vsel %vm1496_vm7, %v2203_v18, %v1187_v44 }
  0xdb   : > { %1326 = vrot.lane.b32.xlu2 %v1311_v32, %s2456_s28  ;;  %v1227_v17 = vpop.permute.xlu0 %1226 }
  0xdc   : > { %v1525_v5 = vsel %vm1521_vm8, %v1502_v39, %v1227_v17 }
  0xdd   : > { %v1489_v37 = vpop.permute.xlu1 %1488  ;;  %v1197_v23 = vpop.permute.xlu2 %1196 }
  0xde   : > { %v1633_v30 = vsel %vm1623_vm14, %v1616_v54, %v1489_v37  ;;  %v1517_v16 = vsel %vm1496_vm7, %v2208_v41, %v1197_v23 }
  0xdf   : > { %v1646_v51 = vsel %vm1640_vm15, %v1633_v30, 0 }
  0xe0   : > { %2188 = vmatmul.msk.bf16.vlgmr.msra.gmra.mxu2 %vm1670_vm0, %v1646_v51 }
  0xe3   : > { %1454 = vrot.lane.b32.xlu2 %v1439_v31, %s2457_s29  ;;  %v1275_v36 = vpop.permute.xlu0 %1274 }
  0xe4   : > { %v1542_v40 = vsel %vm1538_vm9, %v1525_v5, %v1275_v36 }
  0xe5   : > { %v1237_v26 = vpop.permute.xlu1 %1236  ;;  %v1315_v34 = vpop.permute.xlu2 %1314 }
  0xe6   : > { %v1559_v8 = vsel %vm1555_vm10, %v1542_v40, %v1315_v34  ;;  %v1535_v24 = vsel %vm1521_vm8, %v1517_v16, %v1237_v26 }
  0xeb   : > { %v1285_v58 = vpop.permute.xlu0 %1284 }
  0xec   : > { %v1552_v63 = vsel %vm1538_vm9, %v1535_v24, %v1285_v58 }
  0xed   : > { %v1355_v12 = vpop.permute.xlu1 %1354  ;;  %v1325_v38 = vpop.permute.xlu2 %1324 }
  0xee   : > { %v1576_v47 = vsel %vm1572_vm11, %v1559_v8, %v1355_v12  ;;  %v1569_v43 = vsel %vm1555_vm10, %v1552_v63, %v1325_v38  ;;  %v2209_v12 = vld [vmem:[%s2557_s10 + $0x54] sm:$0xff]  ;;  %s2194_s10 = sshll.u32 %s2433_s15, 4 }
  0xef   : > { %s1834_s28 = sadd.s32 %s2195_s27, %s2194_s10 }
  0xf0   : > { %s2196_s29 = sshll.u32 %s1834_s28, 3 }
  0xf1   : > { %s1836_s7 = scalar_lea.hbm %s3410_s2, %s2196_s29 }
  0xf2   : > { %s1839_s9 = sshll.u32 %s1836_s7, 4  ;;  %s1840_s9 = int_to_ptr.hbm [resolvable:$true] %s1839_s9 }
  0xf3   : > { %v1403_v35 = vpop.permute.xlu0 %1402  ;;  %s2337_s10 = sshra.s32 %s1840_s9, 4  ;;  %s2338_s10 = int_to_ptr.hbm [resolvable:$true] %s2337_s10 }
  0xf4   : > { %v1593_v19 = vsel %vm1589_vm12, %v1576_v47, %v1403_v35  ;;  %s2339_s27 = scalar_lea.hbm %s2338_s10, 128  ;;  %p2344_p2 = scmp.lt.s32.totalorder %s2338_s10, %s3410_s2 }
  0xf5   : > { %v1365_v46 = vpop.permute.xlu1 %1364  ;;  %v1443_v11 = vpop.permute.xlu2 %1442  ;;  %p2340_p13 = scmp.ne.s32.totalorder %s2338_s10, %s2339_s27  ;;  %p2345_p4 = scmp.lt.s32.totalorder %s2343_s4, %s2339_s27 }
  0xf6   : > { %v1610_v3 = vsel %vm1606_vm13, %v1593_v19, %v1443_v11  ;;  %v1586_v59 = vsel %vm1572_vm11, %v1569_v43, %v1365_v46 }
  0xf7   : > { %p2341_p0 = pnand %p2340_p13, %p2531_p3  ;;  %p2346_p5 = por %p2345_p4, %p2344_p2 }
  0xf9   : > { %p2342_p1 = pneg %p2341_p0 }
  0xfb   : > { %v1413_v29 = vpop.permute.xlu0 %1412  ;;  %p2347_p6 = pnand %p2346_p5, %p2342_p1 }
  0xfc   : > { %v1603_v55 = vsel %vm1589_vm12, %v1586_v59, %v1413_v29 }
  0xfd   : > { %v1483_v53 = vpop.permute.xlu1 %1482  ;;  %v1191_v49 = vpop.permute.xlu2 %1190 }
  0xfe   : > { %v1627_v57 = vsel %vm1623_vm14, %v1610_v3, %v1483_v53  ;;  %v1508_v4 = vsel %vm1496_vm7, %v2205_v27, %v1191_v49 }
  0xff   : > { %v1643_v20 = vsel %vm1640_vm15, %v1627_v57, 0 }
 0x100   : > { %2185 = vmatmul.msk.bf16.gmra.mxu0 %vm1670_vm0, %v1643_v20 }
 0x103   : > { %v1453_v25 = vpop.permute.xlu0 %1452 }
 0x104   : > { %v1620_v60 = vsel %vm1606_vm13, %v1603_v55, %v1453_v25 }
 0x105   : > { %v1231_v28 = vpop.permute.xlu1 %1230  ;;  %v1493_v62 = vpop.permute.xlu2 %1492 }
 0x106   : > { %v1637_v0 = vsel %vm1623_vm14, %v1620_v60, %v1493_v62  ;;  %v1529_v2 = vsel %vm1521_vm8, %v1508_v4, %v1231_v28 }
 0x107   : > { %v1648_v1 = vsel %vm1640_vm15, %v1637_v0, 0 }
 0x108   : > { %2190 = vmatmul.msk.bf16.vlgmr.msra.gmra.mxu3 %vm1670_vm0, %v1648_v1 }
 0x10b   : > { %v1195_v6 = vpop.permute.xlu0 %1194 }
 0x10c   : > { %v1514_v42 = vsel %vm1496_vm7, %v2207_v45, %v1195_v6 }
 0x10d   : > { %v1279_v7 = vpop.permute.xlu1 %1278  ;;  %v1235_v9 = vpop.permute.xlu2 %1234 }
 0x10e   : > { %v1546_v44 = vsel %vm1538_vm9, %v1529_v2, %v1279_v7  ;;  %v1533_v52 = vsel %vm1521_vm8, %v1514_v42, %v1235_v9 }
 0x113   : > { %v1319_v21 = vpop.permute.xlu0 %1318 }
 0x114   : > { %v1563_v13 = vsel %vm1555_vm10, %v1546_v44, %v1319_v21 }
 0x115   : > { %v1283_v48 = vpop.permute.xlu1 %1282  ;;  %v1359_v50 = vpop.permute.xlu2 %1358 }
 0x116   : > { %v1580_v32 = vsel %vm1572_vm11, %v1563_v13, %v1359_v50  ;;  %v1550_v17 = vsel %vm1538_vm9, %v1533_v52, %v1283_v48 }
 0x11b   : > { %v1323_v61 = vpop.permute.xlu0 %1322 }
 0x11c   : > { %v1567_v22 = vsel %vm1555_vm10, %v1550_v17, %v1323_v61 }
 0x11d   : > { %v1407_v14 = vpop.permute.xlu1 %1406  ;;  %v1363_v15 = vpop.permute.xlu2 %1362 }
 0x11e   : > { %v1597_v10 = vsel %vm1589_vm12, %v1580_v32, %v1407_v14  ;;  %v1584_v51 = vsel %vm1572_vm11, %v1567_v22, %v1363_v15 }
 0x123   : > { %v1447_v56 = vpop.permute.xlu0 %1446 }
 0x124   : > { %v1614_v33 = vsel %vm1606_vm13, %v1597_v10, %v1447_v56 }
 0x125   : > { %v1411_v54 = vpop.permute.xlu1 %1410  ;;  %v1487_v37 = vpop.permute.xlu2 %1486 }
 0x126   : > { %v1631_v23 = vsel %vm1623_vm14, %v1614_v33, %v1487_v37  ;;  %v1601_v31 = vsel %vm1589_vm12, %v1584_v51, %v1411_v54 }
 0x127   : > { %v1645_v30 = vsel %vm1640_vm15, %v1631_v23, 0 }
 0x128   : > { %2187 = vmatmul.msk.bf16.gmra.mxu1 %vm1670_vm0, %v1645_v30 }
 0x12b   : > { %v1451_v36 = vpop.permute.xlu0 %1450 }
 0x12c   : > { %v1618_v26 = vsel %vm1606_vm13, %v1601_v31, %v1451_v36  ;;  %v1700_v34 = vpop.f32.mrf.mxu0 }
 0x12d   : > { %v1491_v18 = vpop.permute.xlu1 %1490  ;;  %1740 = vst [vmem:[%s3313_s24] sm:$0xff] %v1700_v34  ;;  %v1199_v58 = vpop.permute.xlu2 %1198  ;;  %v1777_v28 = vmul.f32 %v1700_v34, %v1700_v34 }
 0x12e   : > { %v1635_v39 = vsel %vm1623_vm14, %v1618_v26, %v1491_v18  ;;  %v1520_v5 = vsel %vm1496_vm7, %v2209_v12, %v1199_v58 }
 0x12f   : > { %v1647_v38 = vsel %vm1640_vm15, %v1635_v39, 0 }
 0x130   : > { %2189 = vmatmul.msk.bf16.gmra.mxu2 %vm1670_vm0, %v1647_v38 }
 0x133   : > { %v1239_v40 = vpop.permute.xlu0 %1238 }
 0x134   : > { %v1702_v35 = vpop.f32.mrf.mxu0  ;;  %v1537_v8 = vsel %vm1521_vm8, %v1520_v5, %v1239_v40 }
 0x135   : > { %v1287_v41 = vpop.permute.xlu1 %1286  ;;  %1741 = vst [vmem:[%s3313_s24 + $0x8] sm:$0xff] %v1702_v35  ;;  %v1327_v46 = vpop.permute.xlu2 %1326  ;;  %v1778_v60 = vmul.f32 %v1702_v35, %v1702_v35  ;;  %v1756_v62 = vadd.f32 %v1702_v35, %v1700_v34 }
 0x136   : > { %v1554_v11 = vsel %vm1538_vm9, %v1537_v8, %v1287_v41 }
 0x137   : > { %v1571_v16 = vsel %vm1555_vm10, %v1554_v11, %v1327_v46  ;;  %v1793_v1 = vadd.f32 %v1778_v60, %v1777_v28 }
 0x13b   : > { %v1367_v47 = vpop.permute.xlu0 %1366 }
 0x13c   : > { %v1588_v19 = vsel %vm1572_vm11, %v1571_v16, %v1367_v47 }
 0x13d   : > { %v1415_v24 = vpop.permute.xlu1 %1414  ;;  %v1455_v29 = vpop.permute.xlu2 %1454 }
 0x13e   : > { %v1605_v3 = vsel %vm1589_vm12, %v1588_v19, %v1415_v24 }
 0x13f   : > { %v1622_v63 = vsel %vm1606_vm13, %v1605_v3, %v1455_v29 }
 0x143   : > { %v1495_v53 = vpop.permute.xlu0 %1494 }
 0x144   : > { %v1639_v49 = vsel %vm1623_vm14, %v1622_v63, %v1495_v53 }
 0x145   : > { %v1649_v57 = vsel %vm1640_vm15, %v1639_v49, 0 }
 0x146   : > { %2191 = vmatmul.msk.bf16.gmra.mxu3 %vm1670_vm0, %v1649_v57 }
 0x153   : > { %v1710_v43 = vpop.f32.mrf.mxu1 }
 0x154   : > { %1744 = vst [vmem:[%s3313_s24 + $0x20] sm:$0xff] %v1710_v43  ;;  %v1781_v48 = vmul.f32 %v1710_v43, %v1710_v43 }
 0x15b   : > { %v1712_v20 = vpop.f32.mrf.mxu1 }
 0x15c   : > { %1745 = vst [vmem:[%s3313_s24 + $0x28] sm:$0xff] %v1712_v20  ;;  %v1782_v13 = vmul.f32 %v1712_v20, %v1712_v20 }
 0x163   : > { %v1720_v59 = vpop.f32.mrf.mxu2 }
 0x164   : > { %1748 = vst [vmem:[%s3313_s24 + $0x40] sm:$0xff] %v1720_v59  ;;  %v1785_v22 = vmul.f32 %v1720_v59, %v1720_v59 }
 0x16b   : > { %v1722_v55 = vpop.f32.mrf.mxu2 }
 0x16c   : > { %1749 = vst [vmem:[%s3313_s24 + $0x48] sm:$0xff] %v1722_v55  ;;  %v1786_v30 = vmul.f32 %v1722_v55, %v1722_v55 }
 0x17d   : > { %v1705_v25 = vpop.f32.mrf.mxu0 }
 0x17e   : > { %1742 = vst [vmem:[%s3313_s24 + $0x10] sm:$0xff] %v1705_v25  ;;  %v1779_v0 = vmul.f32 %v1705_v25, %v1705_v25  ;;  %v1757_v6 = vadd.f32 %v1756_v62, %v1705_v25 }
 0x180   : > { %v1794_v9 = vadd.f32 %v1793_v1, %v1779_v0 }
 0x185   : > { %v1707_v7 = vpop.f32.mrf.mxu0 }
 0x186   : > { %1743 = vst [vmem:[%s3313_s24 + $0x18] sm:$0xff] %v1707_v7  ;;  %v1758_v27 = vadd.f32 %v1757_v6, %v1707_v7  ;;  %v1780_v21 = vmul.f32 %v1707_v7, %v1707_v7 }
 0x188   : > { %v1759_v50 = vadd.f32 %v1758_v27, %v1710_v43  ;;  %v1795_v4 = vadd.f32 %v1794_v9, %v1780_v21 }
 0x18a   : > { %v1796_v2 = vadd.f32 %v1795_v4, %v1781_v48  ;;  %v1760_v14 = vadd.f32 %v1759_v50, %v1712_v20 }
 0x18b   : > { %v1730_v45 = vpop.f32.mrf.mxu3 }
 0x18c   : > { %1752 = vst [vmem:[%s3313_s24 + $0x60] sm:$0xff] %v1730_v45  ;;  %v1797_v32 = vadd.f32 %v1796_v2, %v1782_v13  ;;  %v1789_v12 = vmul.f32 %v1730_v45, %v1730_v45 }
 0x193   : > { %v1732_v61 = vpop.f32.mrf.mxu3 }
 0x194   : > { %1753 = vst [vmem:[%s3313_s24 + $0x68] sm:$0xff] %v1732_v61  ;;  %v1790_v41 = vmul.f32 %v1732_v61, %v1732_v61 }
 0x1a5   : > { %v1715_v44 = vpop.f32.mrf.mxu1 }
 0x1a6   : > { %1746 = vst [vmem:[%s3313_s24 + $0x30] sm:$0xff] %v1715_v44  ;;  %v1783_v15 = vmul.f32 %v1715_v44, %v1715_v44  ;;  %v1761_v42 = vadd.f32 %v1760_v14, %v1715_v44 }
 0x1a8   : > { %v1798_v10 = vadd.f32 %v1797_v32, %v1783_v15 }
 0x1ad   : > { %v1717_v52 = vpop.f32.mrf.mxu1 }
 0x1ae   : > { %1747 = vst [vmem:[%s3313_s24 + $0x38] sm:$0xff] %v1717_v52  ;;  %v1762_v56 = vadd.f32 %v1761_v42, %v1717_v52  ;;  %v1784_v17 = vmul.f32 %v1717_v52, %v1717_v52 }
 0x1b0   : > { %v1799_v33 = vadd.f32 %v1798_v10, %v1784_v17  ;;  %v1763_v54 = vadd.f32 %v1762_v56, %v1720_v59 }
 0x1b2   : > { %v1800_v23 = vadd.f32 %v1799_v33, %v1785_v22  ;;  %v1764_v51 = vadd.f32 %v1763_v54, %v1722_v55 }
 0x1b3   : > { %v1725_v37 = vpop.f32.mrf.mxu2 }
 0x1b4   : > { %1750 = vst [vmem:[%s3313_s24 + $0x50] sm:$0xff] %v1725_v37  ;;  %v1787_v31 = vmul.f32 %v1725_v37, %v1725_v37  ;;  %v1801_v36 = vadd.f32 %v1800_v23, %v1786_v30  ;;  %v1765_v26 = vadd.f32 %v1764_v51, %v1725_v37 }
 0x1b6   : > { %v1802_v18 = vadd.f32 %v1801_v36, %v1787_v31 }
 0x1bb   : > { %v1727_v34 = vpop.f32.mrf.mxu2 }
 0x1bc   : > { %1751 = vst [vmem:[%s3313_s24 + $0x58] sm:$0xff] %v1727_v34  ;;  %v1766_v58 = vadd.f32 %v1765_v26, %v1727_v34  ;;  %v1788_v39 = vmul.f32 %v1727_v34, %v1727_v34 }
 0x1be   : > { %v1767_v38 = vadd.f32 %v1766_v58, %v1730_v45  ;;  %v1803_v5 = vadd.f32 %v1802_v18, %v1788_v39 }
 0x1c0   : > { %v1804_v40 = vadd.f32 %v1803_v5, %v1789_v12  ;;  %v1768_v8 = vadd.f32 %v1767_v38, %v1732_v61 }
 0x1c2   : > { %v1805_v47 = vadd.f32 %v1804_v40, %v1790_v41 }
 0x1c9   : > { %v1735_v35 = vpop.f32.mrf.mxu3 }
 0x1ca   : > { %1754 = vst [vmem:[%s3313_s24 + $0x70] sm:$0xff] %v1735_v35  ;;  %v1791_v46 = vmul.f32 %v1735_v35, %v1735_v35  ;;  %v1769_v11 = vadd.f32 %v1768_v8, %v1735_v35 }
 0x1cc   : > { %v1806_v19 = vadd.f32 %v1805_v47, %v1791_v46 }
 0x1d1   : > { %v1737_v16 = vpop.f32.mrf.mxu3 }
 0x1d2   : > { %1755 = vst [vmem:[%s3313_s24 + $0x78] sm:$0xff] %v1737_v16  ;;  %v1770_v24 = vadd.f32 %v1769_v11, %v1737_v16  ;;  %v1792_v3 = vmul.f32 %v1737_v16, %v1737_v16 }
 0x1d3   : > { %2350 = shalt.err (!%p2347_p6)
}
 0x1d4   : > { %s2459_s16 = smov 128   ;;  %v1771_v29 = vrot.slane %v1770_v24, 4  ;;  %v1807_v63 = vadd.f32 %v1806_v19, %v1792_v3  ;;  %s1852_s24 = sadd.s32 %s2433_s15, %s2197_s5  ;;  %vm1814_vm1 = vcmask 1040384  }
 0x1d5   : > { %2238 = dma.vmem_to_hbm [thread:$0]  (%p2531_p3), %s1838_s8, 2048, %s1840_s9, %s1818_s20, %s2459_s16, %s2459_s16, %s2453_s21  }
 0x1d6   : > { %v1772_v53 = vadd.f32 %v1771_v29, %v1770_v24  ;;  %v1808_v49 = vrot.slane %v1807_v63, 4  ;;  %s1983_s28 = sshll.u32 %s3303_s11, 1  ;;  %s2198_s10 = sshll.u32 %s1852_s24, 1 }
 0x1d7   : > { %s1854_s4 = scalar_lea.hbm %s3411_s3, %s2198_s10  ;;  %s190_s21 = scalar_lea.vmem [#allocation4], %s1983_s28 }
 0x1d8   : > { %v1773_v57 = vrot.slane %v1772_v53, 2  ;;  %v1809_v43 = vadd.f32 %v1808_v49, %v1807_v63  ;;  %s1856_s8 = sshll.u32 %s190_s21, 4  ;;  %s1858_s15 = sshll.u32 %s1854_s4, 4  ;;  %s1857_s8 = int_to_ptr.vmem [resolvable:$true] %s1856_s8  ;;  %s1859_s15 = int_to_ptr.hbm [resolvable:$true] %s1858_s15 }
 0x1d9   : > { %s1823_s9 = scalar_lea.sflag [#allocation5], %s3303_s11  ;;  %s2365_s5 = sshra.s32 %s1859_s15, 4  ;;  %s2366_s5 = int_to_ptr.hbm [resolvable:$true] %s2365_s5 }
 0x1da   : > { %v1774_v20 = vadd.f32 %v1773_v57, %v1772_v53  ;;  %v1810_v59 = vrot.slane %v1809_v43, 2  ;;  %s2367_s20 = scalar_lea.hbm %s2366_s5, 2  ;;  %s2371_s16 = scalar_lea.hbm %s3411_s3, 8 }
 0x1db   : > { %p2368_p7 = scmp.ne.s32.totalorder %s2366_s5, %s2367_s20  ;;  %p2372_p11 = scmp.lt.s32.totalorder %s2366_s5, %s3411_s3 }
 0x1dc   : > { %v1775_v55 = vrot.slane %v1774_v20, 1  ;;  %v1811_v25 = vadd.f32 %v1810_v59, %v1809_v43  ;;  %p2373_p12 = scmp.lt.s32.totalorder %s2371_s16, %s2367_s20 }
 0x1dd   : > { %p2369_p9 = pnand %p2368_p7, %p2531_p3 }
 0x1de   : > { %v1812_v60 = vrot.slane %v1811_v25, 1  ;;  %v1776_v28 = vadd.f32 %v1775_v55, %v1774_v20  ;;  %p2374_p13 = por %p2373_p12, %p2372_p11 }
 0x1df   : > { %p2370_p10 = pneg %p2369_p9 }
 0x1e0   : > { %v1813_v62 = vadd.f32 %v1812_v60, %v1811_v25 }
 0x1e1   : > { %p2375_p0 = pnand %p2374_p13, %p2370_p10 }
 0x1e2   : > { %v1815_v0 = vsel %vm1814_vm1, %v1776_v28, %v1813_v62 }
 0x1e3   : > { %1816 = vst [vmem:[%s190_s21] sm:$0x3] %v1815_v0 }
 0x1e4   : > { %2378 = shalt.err (!%p2375_p0)
}
 0x1e5   : > { %2239 = dma.vmem_to_hbm [thread:$0]  (%p2531_p3), %s1857_s8, 32, %s1859_s15, %s1823_s9  }
 0x1e6 PF: > { %p2249_p1 = scmp.ge.s32.totalorder %s2449_s19, 2  ;;  %s1870_s11 = sand.u32 1, %s2421_s12  }
 0x1e7   : > { %s1871_s10 = scalar_lea.sflag [#allocation3], %s1870_s11 }
 0x1e8   : > { %p2243_p2 = pnand %p2249_p1, %p2540_p8 }
 0x1ea   : > { %p2244_p4 = pneg %p2243_p2 }
 0x1ec   : > { %2412 = dma.done.wait (%p2244_p4), %s1871_s10, 2048  }
 0x1ed   : > { %2414 = vsyncadd (%p2244_p4), %s1871_s10, 4294965248  ;;  %s1881_s27 = scalar_lea.sflag [#allocation5], %s1870_s11 }
 0x1ee   : > { %2416 = dma.done.wait (%p2244_p4), %s1881_s27, 32  }
 0x1ef   : > { %2418 = vsyncadd (%p2244_p4), %s1881_s27, 4294967264  ;;  %s20_s19 = sadd.s32 1, %s2449_s19   ;;  %s3418_s12 = smov %s2425_s13 }
 0x1f0   : > { %p17_p5 = scmp.ge.s32.totalorder %s20_s19, 6   ;;  %s3419_s13 = smov %s2429_s14 }
 0x1f1   : > { %s3420_s14 = smov %s2549_s30  ;;  %s3421_s15 = smov %s2441_s17 }
 0x1f2   : > { %s3422_s16 = smov %s2445_s18  ;;  %s3423_s17 = smov %s3426_s22 }
 0x1f3   : > { %s3424_s18 = smov %s3430_s23  ;;  %19 = sbr.rel (!%p17_p5) target bundleno = 7 (0x7), region = 83 }
 0x1f8   :  { %1887 = vsyncpa [#allocation3], 1 }
 0x1f9   :  { %1889 = vsyncpa [#allocation3 + $0x1], 1 }
 0x1fa   :  { %1890 = vsyncpa [#allocation5], 1 }
 0x1fb   :  { %1892 = vsyncpa [#allocation5 + $0x1], 1 }

</bundles_post_ra>
